<compile_context>
chip_gen: v6e
topology: v6e:2x2x1
jax: 0.10.0
libtpu: 0.0.40
codegen_flags: <defaults>
</compile_context>

<pallas_src>
import functools

import jax
import jax.numpy as jnp
from jax import lax
from jax.experimental import pallas as pl
from jax.experimental.pallas import tpu as pltpu

NUM_NODE_REL = 7          # CustomRGCNConv relations (encoder built with 7)
NUM_EDGE_REL = 8          # EdgeMessagePassingLayer relations
REL_PAD = 8               # node relations zero-padded 7 -> 8
REL_CHUNK = 4             # relations staged per grid step -> grid = (2,)
BN_EPS = 1e-5

RAW_NODE_DIM = 22         # conv1 input dim in the PyTorch module
RAW_EDGE_DIM = 53         # emp1 input dim in the PyTorch module
PAD_IN = 128              # first-layer feature dims zero-padded to a lane tile

EMP_RAW_DIMS = [(RAW_EDGE_DIM, 256), (256, 512), (512, 1024),
                (1024, 1024), (1024, 1024), (1024, 512)]
CONV_RAW_DIMS = [(RAW_NODE_DIM, 256), (256, 512), (512, 1024),
                 (1024, 1024), (1024, 1024), (1024, 512)]


def _vmem_limit_bytes():
    # Generation-aware VMEM cap: ~75% of physical, <= 100 MiB.
    # -> ~48 MiB on v7x (64 MiB physical), ~96 MiB on v5e/v6e (128 MiB).
    try:
        cap = int(pltpu.get_tpu_info().vmem_capacity_bytes)
        return int(min(cap * 3 // 4, 100 * 1024 * 1024))
    except Exception:  # conservative fallback that is safe on every generation
        return 48 * 1024 * 1024


VMEM_LIMIT_BYTES = _vmem_limit_bytes()


# -----------------------------------------------------------------------------
# Fused per-layer kernel, grid = (num_rel / REL_CHUNK,) = (2,).
#   every step g : stage E @ V_r and X @ W_r for relations [4g, 4g+4) into the
#                  bf16 VMEM staging scratches (K = din >= 128, good MXU fill).
#   last step    : Emsg' = relu( line_adj_cat @ EW_stage + E @ V_self + b_e )
#                  X'    = BN( adj_cat @ XW_stage + X @ W_root
#                              + Inc @ Emsg' + b ) [; relu]
#                  pooled = per-graph max of X' (fused decoder pool).
# -----------------------------------------------------------------------------
def _layer_kernel(e_ref, x_ref, ladj_ref, adj_ref, inc_ref,
                  emp_w_ref, conv_w_ref, emp_ws_ref, conv_wr_ref, sb_ref,
                  emsg_ref, xout_ref, pool_ref,
                  ew_stage, xw_stage,
                  *, rel_chunk, n_edge, n_node, num_graphs, nodes_per_graph,
                  apply_relu):
    g = pl.program_id(0)
    last = pl.num_programs(0) - 1

    # ---- stage per-relation weight matmuls for this relation chunk ----
    for j in range(rel_chunk):                       # static unroll (4 pairs)
        rel = g * rel_chunk + j
        e_off = pl.multiple_of(rel * n_edge, n_edge)
        ew_stage[pl.ds(e_off, n_edge), :] = jnp.dot(
            e_ref[...], emp_w_ref[j],
            preferred_element_type=jnp.float32).astype(jnp.bfloat16)
        n_off = pl.multiple_of(rel * n_node, n_node)
        xw_stage[pl.ds(n_off, n_node), :] = jnp.dot(
            x_ref[...], conv_w_ref[j],
            preferred_element_type=jnp.float32).astype(jnp.bfloat16)

    # ---- finalize: big-K contractions + BN/ReLU + fused max pool ----
    @pl.when(g == last)
    def _():
        emp_b = sb_ref[0:1, :]
        conv_b = sb_ref[1:2, :]
        gamma = sb_ref[2:3, :]
        beta = sb_ref[3:4, :]

        # edge message passing: sum_r B_r @ (E @ V_r) as ONE (E, R*E)@(R*E, dout)
        emsg = (jnp.dot(ladj_ref[...], ew_stage[...],
                        preferred_element_type=jnp.float32)
                + jnp.dot(e_ref[...], emp_ws_ref[...],
                          preferred_element_type=jnp.float32)
                + emp_b)
        emsg = jnp.maximum(emsg, 0.0)
        emsg_bf = emsg.astype(jnp.bfloat16)
        emsg_ref[...] = emsg_bf

        # relational node conv: ONE (N, R*N)@(R*N, dout) + root + incidence + bias
        xacc = (jnp.dot(adj_ref[...], xw_stage[...],
                        preferred_element_type=jnp.float32)
                + jnp.dot(x_ref[...], conv_wr_ref[...],
                          preferred_element_type=jnp.float32)
                + jnp.dot(inc_ref[...], emsg_bf,
                          preferred_element_type=jnp.float32)
                + conv_b)

        # BatchNorm over nodes, single pass (sum & sum of squares), batch stats.
        inv_n = 1.0 / n_node
        mean = jnp.sum(xacc, axis=0, keepdims=True) * inv_n
        mean_sq = jnp.sum(xacc * xacc, axis=0, keepdims=True) * inv_n
        var = mean_sq - mean * mean
        out = gamma * (xacc - mean) * lax.rsqrt(var + BN_EPS) + beta
        if apply_relu:
            out = jnp.maximum(out, 0.0)
        xout_ref[...] = out.astype(jnp.bfloat16)

        # fused global max pool (equal-sized contiguous graphs).
        rows = [jnp.max(out[b * nodes_per_graph:(b + 1) * nodes_per_graph, :],
                        axis=0, keepdims=True) for b in range(num_graphs)]
        pool_ref[...] = jnp.concatenate(rows, axis=0)


def gearnet_layer(e_feat, x, line_adj_cat, adj_cat, inc,
                  emp_w, emp_wself, conv_w, conv_wroot, scale_bias,
                  *, num_graphs, apply_relu):
    n_edge, din_e = e_feat.shape
    n_node, din_x = x.shape
    n_rel = emp_w.shape[0]
    dout = emp_w.shape[2]
    assert conv_w.shape[0] == n_rel and n_rel % REL_CHUNK == 0
    grid = (n_rel // REL_CHUNK,)

    kernel = functools.partial(
        _layer_kernel, rel_chunk=REL_CHUNK, n_edge=n_edge, n_node=n_node,
        num_graphs=num_graphs, nodes_per_graph=n_node // num_graphs,
        apply_relu=apply_relu)

    fixed2 = lambda g: (0, 0)
    wmap = lambda g: (g, 0, 0)

    return pl.pallas_call(
        kernel,
        out_shape=(
            jax.ShapeDtypeStruct((n_edge, dout), jnp.bfloat16),    # new edge msgs
            jax.ShapeDtypeStruct((n_node, dout), jnp.bfloat16),    # new node feats
            jax.ShapeDtypeStruct((num_graphs, dout), jnp.float32),  # fused pool
        ),
        grid_spec=pltpu.PrefetchScalarGridSpec(
            num_scalar_prefetch=0,
            grid=grid,
            in_specs=[
                pl.BlockSpec((n_edge, din_e), fixed2),           # e_feat  (bf16)
                pl.BlockSpec((n_node, din_x), fixed2),           # x       (bf16)
                pl.BlockSpec((n_edge, n_rel * n_edge), fixed2),  # line_adj_cat
                pl.BlockSpec((n_node, n_rel * n_node), fixed2),  # adj_cat
                pl.BlockSpec((n_node, n_edge), fixed2),          # incidence
                pl.BlockSpec((REL_CHUNK, din_e, dout), wmap),    # emp_w (streamed)
                pl.BlockSpec((REL_CHUNK, din_x, dout), wmap),    # conv_w (streamed)
                pl.BlockSpec((din_e, dout), fixed2),             # emp_wself
                pl.BlockSpec((din_x, dout), fixed2),             # conv_wroot
                pl.BlockSpec((8, dout), fixed2),                 # [b_e,b,gamma,beta]
            ],
            out_specs=(
                pl.BlockSpec((n_edge, dout), fixed2),
                pl.BlockSpec((n_node, dout), fixed2),
                pl.BlockSpec((num_graphs, dout), fixed2),
            ),
            scratch_shapes=[
                pltpu.VMEM((n_rel * n_edge, dout), jnp.bfloat16),  # staged E@V_r
                pltpu.VMEM((n_rel * n_node, dout), jnp.bfloat16),  # staged X@W_r
            ],
        ),
        compiler_params=pltpu.CompilerParams(
            dimension_semantics=("arbitrary",),
            vmem_limit_bytes=VMEM_LIMIT_BYTES),
    )(e_feat, x, line_adj_cat, adj_cat, inc,
      emp_w, conv_w, emp_wself, conv_wroot, scale_bias)


# -----------------------------------------------------------------------------
# Full model forward: 6x fused (emp -> conv -> BN[-> relu] -> pool) layers.
# Decoder with task_id=0 only global-max-pools the final node features, which
# is fused into the last layer's kernel.
# -----------------------------------------------------------------------------
def gearnet_edge_model_forward(params, graph):
    emsg = graph["edge_attr"]     # bf16 (E, PAD_IN)
    x = graph["x"]                # bf16 (N, PAD_IN)
    pooled = None
    for i in range(6):
        emsg, x, pooled = gearnet_layer(
            emsg, x, graph["line_adj_cat"], graph["adj_cat"], graph["inc"],
            params["emp_w"][i], params["emp_wself"][i],
            params["conv_w"][i], params["conv_wroot"][i],
            params["scale_bias"][i],
            num_graphs=graph["num_graphs"],
            apply_relu=(i < 5),   # conv6 output has BN but no ReLU
        )
    return pooled


# -----------------------------------------------------------------------------
# Deterministic parameter / input construction
# -----------------------------------------------------------------------------
def init_params(key):
    params = {"emp_w": [], "emp_wself": [], "conv_w": [], "conv_wroot": [],
              "scale_bias": []}

    def dense(k, shape, fan_in):
        return jax.random.normal(k, shape, jnp.float32) / jnp.sqrt(jnp.float32(fan_in))

    for li in range(6):
        din_e, dout = EMP_RAW_DIMS[li]
        din_x, _ = CONV_RAW_DIMS[li]
        key, k1, k2, k3, k4 = jax.random.split(key, 5)
        w_e = dense(k1, (NUM_EDGE_REL, din_e, dout), din_e)
        ws_e = dense(k2, (din_e, dout), din_e)
        w_x = dense(k3, (NUM_NODE_REL, din_x, dout), din_x)
        wr_x = dense(k4, (din_x, dout), din_x)
        if li == 0:   # zero-pad first-layer feature dims to PAD_IN (exact)
            w_e = jnp.pad(w_e, ((0, 0), (0, PAD_IN - din_e), (0, 0)))
            ws_e = jnp.pad(ws_e, ((0, PAD_IN - din_e), (0, 0)))
            w_x = jnp.pad(w_x, ((0, 0), (0, PAD_IN - din_x), (0, 0)))
            wr_x = jnp.pad(wr_x, ((0, PAD_IN - din_x), (0, 0)))
        # zero-pad node relations 7 -> 8 (matching zero adjacency columns, exact)
        w_x = jnp.pad(w_x, ((0, REL_PAD - NUM_NODE_REL), (0, 0), (0, 0)))

        params["emp_w"].append(w_e.astype(jnp.bfloat16))
        params["emp_wself"].append(ws_e.astype(jnp.bfloat16))
        params["conv_w"].append(w_x.astype(jnp.bfloat16))
        params["conv_wroot"].append(wr_x.astype(jnp.bfloat16))
        # rows: emp bias, conv bias, BN gamma, BN beta (padded to a full 8-row tile)
        sb = jnp.zeros((8, dout), jnp.float32).at[2, :].set(1.0)
        params["scale_bias"].append(sb)
    return params


def build_graph(key, N=16, E=32, EM=64, B=2):
    nodes_per_graph = N // B
    k = jax.random.split(key, 8)

    x = jax.random.normal(k[0], (N, RAW_NODE_DIM), jnp.float32)
    edge_attr = jax.random.normal(k[1], (E, RAW_EDGE_DIM), jnp.float32)
    # lane-pad first-layer feature dims to 128 (exact; matching zero rows in W)
    x = jnp.pad(x, ((0, 0), (0, PAD_IN - RAW_NODE_DIM))).astype(jnp.bfloat16)
    edge_attr = jnp.pad(edge_attr,
                        ((0, 0), (0, PAD_IN - RAW_EDGE_DIM))).astype(jnp.bfloat16)

    # node-graph edges, kept within their graph
    edge_graph = jnp.repeat(jnp.arange(B), E // B)
    src = jax.random.randint(k[2], (E,), 0, nodes_per_graph) + edge_graph * nodes_per_graph
    dst = jax.random.randint(k[3], (E,), 0, nodes_per_graph) + edge_graph * nodes_per_graph
    edge_type = jax.random.randint(k[4], (E,), 0, NUM_NODE_REL)

    # line-graph (edge-message) edges
    em_src = jax.random.randint(k[5], (EM,), 0, E)
    em_dst = jax.random.randint(k[6], (EM,), 0, E)
    em_rel = jax.random.randint(k[7], (EM,), 0, NUM_EDGE_REL)

    # densified, relation-concatenated structure (small integer counts -> exact bf16)
    adj_cat = jnp.zeros((N, REL_PAD * N), jnp.float32
                        ).at[dst, edge_type * N + src].add(1.0).astype(jnp.bfloat16)
    line_adj_cat = jnp.zeros((E, NUM_EDGE_REL * E), jnp.float32
                             ).at[em_dst, em_rel * E + em_src].add(1.0).astype(jnp.bfloat16)
    inc = jnp.zeros((N, E), jnp.float32
                    ).at[dst, jnp.arange(E)].add(1.0).astype(jnp.bfloat16)

    return {"x": x, "edge_attr": edge_attr, "adj_cat": adj_cat,
            "line_adj_cat": line_adj_cat, "inc": inc, "num_graphs": B}


if __name__ == "__main__":
    root_key = jax.random.PRNGKey(0)
    pkey, gkey = jax.random.split(root_key)

    params = init_params(pkey)
    graph = build_graph(gkey, N=16, E=32, EM=64, B=2)

    out = gearnet_edge_model_forward(params, graph)
    out = jax.block_until_ready(out)

    assert out.shape == (2, 512), out.shape
    assert bool(jnp.all(jnp.isfinite(out)))
    print("KERNEL_OK")
</pallas_src>

<mosaic_0001>
module attributes {stable_mosaic.version = 11 : i64} {
  func.func @_layer_kernel(%arg0: i32, %arg1: memref<32x128xbf16, #tpu.memory_space<vmem>>, %arg2: memref<16x128xbf16, #tpu.memory_space<vmem>>, %arg3: memref<32x256xbf16, #tpu.memory_space<vmem>>, %arg4: memref<16x128xbf16, #tpu.memory_space<vmem>>, %arg5: memref<16x32xbf16, #tpu.memory_space<vmem>>, %arg6: memref<4x128x256xbf16, #tpu.memory_space<vmem>>, %arg7: memref<4x128x256xbf16, #tpu.memory_space<vmem>>, %arg8: memref<128x256xbf16, #tpu.memory_space<vmem>>, %arg9: memref<128x256xbf16, #tpu.memory_space<vmem>>, %arg10: memref<8x256xf32, #tpu.memory_space<vmem>>, %arg11: memref<32x256xbf16, #tpu.memory_space<vmem>>, %arg12: memref<16x256xbf16, #tpu.memory_space<vmem>>, %arg13: memref<2x256xf32, #tpu.memory_space<vmem>>, %arg14: memref<256x256xbf16, #tpu.memory_space<vmem>>, %arg15: memref<128x256xbf16, #tpu.memory_space<vmem>>) attributes {dimension_semantics = [#tpu.dimension_semantics<arbitrary>], iteration_bounds = array<i64: 2>, scalar_prefetch = 0 : i64, scratch_operands = 2 : i64, tpu.core_type = #tpu.core_type<tc>, window_params = [{pipeline_mode = #tpu.pipeline_mode<synchronous>, transform_indices = @transform_0, window_bounds = array<i64: 32, 128>}, {pipeline_mode = #tpu.pipeline_mode<synchronous>, transform_indices = @transform_1, window_bounds = array<i64: 16, 128>}, {pipeline_mode = #tpu.pipeline_mode<synchronous>, transform_indices = @transform_2, window_bounds = array<i64: 32, 256>}, {pipeline_mode = #tpu.pipeline_mode<synchronous>, transform_indices = @transform_3, window_bounds = array<i64: 16, 128>}, {pipeline_mode = #tpu.pipeline_mode<synchronous>, transform_indices = @transform_4, window_bounds = array<i64: 16, 32>}, {transform_indices = @transform_5, window_bounds = array<i64: 4, 128, 256>}, {transform_indices = @transform_6, window_bounds = array<i64: 4, 128, 256>}, {pipeline_mode = #tpu.pipeline_mode<synchronous>, transform_indices = @transform_7, window_bounds = array<i64: 128, 256>}, {pipeline_mode = #tpu.pipeline_mode<synchronous>, transform_indices = @transform_8, window_bounds = array<i64: 128, 256>}, {pipeline_mode = #tpu.pipeline_mode<synchronous>, transform_indices = @transform_9, window_bounds = array<i64: 8, 256>}, {pipeline_mode = #tpu.pipeline_mode<synchronous>, transform_indices = @transform_10, window_bounds = array<i64: 32, 256>}, {pipeline_mode = #tpu.pipeline_mode<synchronous>, transform_indices = @transform_11, window_bounds = array<i64: 16, 256>}, {pipeline_mode = #tpu.pipeline_mode<synchronous>, transform_indices = @transform_12, window_bounds = array<i64: 2, 256>}]} {
    %c4_i32 = arith.constant 4 : i32
    %0 = arith.muli %arg0, %c4_i32 : i32
    %c0_i32 = arith.constant 0 : i32
    %1 = arith.addi %0, %c0_i32 : i32
    %c32_i32 = arith.constant 32 : i32
    %2 = arith.muli %1, %c32_i32 : i32
    %3 = tpu.assume_multiple %2, 32 : i32
    %c0 = arith.constant 0 : index
    %c0_0 = arith.constant 0 : index
    %4 = vector.load %arg1[%c0, %c0_0] : memref<32x128xbf16, #tpu.memory_space<vmem>>, vector<32x128xbf16>
    %c0_1 = arith.constant 0 : index
    %c0_2 = arith.constant 0 : index
    %c0_3 = arith.constant 0 : index
    %5 = vector.load %arg6[%c0_1, %c0_2, %c0_3] : memref<4x128x256xbf16, #tpu.memory_space<vmem>>, vector<1x128x256xbf16>
    %6 = vector.shape_cast %5 : vector<1x128x256xbf16> to vector<128x256xbf16>
    %cst = arith.constant dense<0.000000e+00> : vector<32x256xf32>
    %7 = tpu.matmul %4, %6, %cst {dimension_numbers = #tpu.dot_dimension_numbers<[1], [0], [0], [1], [0, 0, 1, 1], [], []>} : vector<32x128xbf16>, vector<128x256xbf16>, vector<32x256xf32> -> vector<32x256xf32>
    %8 = arith.truncf %7 : vector<32x256xf32> to vector<32x256xbf16>
    %9 = arith.index_cast %3 : i32 to index
    %c0_4 = arith.constant 0 : index
    %10 = vector.load %arg14[%9, %c0_4] : memref<256x256xbf16, #tpu.memory_space<vmem>>, vector<32x256xbf16>
    tpu.vector_store %arg14[%9, %c0_4], %8 {strides = array<i32>} : memref<256x256xbf16, #tpu.memory_space<vmem>>, vector<32x256xbf16>,
    %c16_i32 = arith.constant 16 : i32
    %11 = arith.muli %1, %c16_i32 : i32
    %12 = tpu.assume_multiple %11, 16 : i32
    %c0_5 = arith.constant 0 : index
    %c0_6 = arith.constant 0 : index
    %13 = vector.load %arg2[%c0_5, %c0_6] : memref<16x128xbf16, #tpu.memory_space<vmem>>, vector<16x128xbf16>
    %c0_7 = arith.constant 0 : index
    %c0_8 = arith.constant 0 : index
    %c0_9 = arith.constant 0 : index
    %14 = vector.load %arg7[%c0_7, %c0_8, %c0_9] : memref<4x128x256xbf16, #tpu.memory_space<vmem>>, vector<1x128x256xbf16>
    %15 = vector.shape_cast %14 : vector<1x128x256xbf16> to vector<128x256xbf16>
    %cst_10 = arith.constant dense<0.000000e+00> : vector<16x256xf32>
    %16 = tpu.matmul %13, %15, %cst_10 {dimension_numbers = #tpu.dot_dimension_numbers<[1], [0], [0], [1], [0, 0, 1, 1], [], []>} : vector<16x128xbf16>, vector<128x256xbf16>, vector<16x256xf32> -> vector<16x256xf32>
    %17 = arith.truncf %16 : vector<16x256xf32> to vector<16x256xbf16>
    %18 = arith.index_cast %12 : i32 to index
    %c0_11 = arith.constant 0 : index
    %19 = vector.load %arg15[%18, %c0_11] : memref<128x256xbf16, #tpu.memory_space<vmem>>, vector<16x256xbf16>
    tpu.vector_store %arg15[%18, %c0_11], %17 {strides = array<i32>} : memref<128x256xbf16, #tpu.memory_space<vmem>>, vector<16x256xbf16>,
    %c4_i32_12 = arith.constant 4 : i32
    %20 = arith.muli %arg0, %c4_i32_12 : i32
    %c1_i32 = arith.constant 1 : i32
    %21 = arith.addi %20, %c1_i32 : i32
    %c32_i32_13 = arith.constant 32 : i32
    %22 = arith.muli %21, %c32_i32_13 : i32
    %23 = tpu.assume_multiple %22, 32 : i32
    %c0_14 = arith.constant 0 : index
    %c0_15 = arith.constant 0 : index
    %24 = vector.load %arg1[%c0_14, %c0_15] : memref<32x128xbf16, #tpu.memory_space<vmem>>, vector<32x128xbf16>
    %c1 = arith.constant 1 : index
    %c0_16 = arith.constant 0 : index
    %c0_17 = arith.constant 0 : index
    %25 = vector.load %arg6[%c1, %c0_16, %c0_17] : memref<4x128x256xbf16, #tpu.memory_space<vmem>>, vector<1x128x256xbf16>
    %26 = vector.shape_cast %25 : vector<1x128x256xbf16> to vector<128x256xbf16>
    %cst_18 = arith.constant dense<0.000000e+00> : vector<32x256xf32>
    %27 = tpu.matmul %24, %26, %cst_18 {dimension_numbers = #tpu.dot_dimension_numbers<[1], [0], [0], [1], [0, 0, 1, 1], [], []>} : vector<32x128xbf16>, vector<128x256xbf16>, vector<32x256xf32> -> vector<32x256xf32>
    %28 = arith.truncf %27 : vector<32x256xf32> to vector<32x256xbf16>
    %29 = arith.index_cast %23 : i32 to index
    %c0_19 = arith.constant 0 : index
    %30 = vector.load %arg14[%29, %c0_19] : memref<256x256xbf16, #tpu.memory_space<vmem>>, vector<32x256xbf16>
    tpu.vector_store %arg14[%29, %c0_19], %28 {strides = array<i32>} : memref<256x256xbf16, #tpu.memory_space<vmem>>, vector<32x256xbf16>,
    %c16_i32_20 = arith.constant 16 : i32
    %31 = arith.muli %21, %c16_i32_20 : i32
    %32 = tpu.assume_multiple %31, 16 : i32
    %c0_21 = arith.constant 0 : index
    %c0_22 = arith.constant 0 : index
    %33 = vector.load %arg2[%c0_21, %c0_22] : memref<16x128xbf16, #tpu.memory_space<vmem>>, vector<16x128xbf16>
    %c1_23 = arith.constant 1 : index
    %c0_24 = arith.constant 0 : index
    %c0_25 = arith.constant 0 : index
    %34 = vector.load %arg7[%c1_23, %c0_24, %c0_25] : memref<4x128x256xbf16, #tpu.memory_space<vmem>>, vector<1x128x256xbf16>
    %35 = vector.shape_cast %34 : vector<1x128x256xbf16> to vector<128x256xbf16>
    %cst_26 = arith.constant dense<0.000000e+00> : vector<16x256xf32>
    %36 = tpu.matmul %33, %35, %cst_26 {dimension_numbers = #tpu.dot_dimension_numbers<[1], [0], [0], [1], [0, 0, 1, 1], [], []>} : vector<16x128xbf16>, vector<128x256xbf16>, vector<16x256xf32> -> vector<16x256xf32>
    %37 = arith.truncf %36 : vector<16x256xf32> to vector<16x256xbf16>
    %38 = arith.index_cast %32 : i32 to index
    %c0_27 = arith.constant 0 : index
    %39 = vector.load %arg15[%38, %c0_27] : memref<128x256xbf16, #tpu.memory_space<vmem>>, vector<16x256xbf16>
    tpu.vector_store %arg15[%38, %c0_27], %37 {strides = array<i32>} : memref<128x256xbf16, #tpu.memory_space<vmem>>, vector<16x256xbf16>,
    %c4_i32_28 = arith.constant 4 : i32
    %40 = arith.muli %arg0, %c4_i32_28 : i32
    %c2_i32 = arith.constant 2 : i32
    %41 = arith.addi %40, %c2_i32 : i32
    %c32_i32_29 = arith.constant 32 : i32
    %42 = arith.muli %41, %c32_i32_29 : i32
    %43 = tpu.assume_multiple %42, 32 : i32
    %c0_30 = arith.constant 0 : index
    %c0_31 = arith.constant 0 : index
    %44 = vector.load %arg1[%c0_30, %c0_31] : memref<32x128xbf16, #tpu.memory_space<vmem>>, vector<32x128xbf16>
    %c2 = arith.constant 2 : index
    %c0_32 = arith.constant 0 : index
    %c0_33 = arith.constant 0 : index
    %45 = vector.load %arg6[%c2, %c0_32, %c0_33] : memref<4x128x256xbf16, #tpu.memory_space<vmem>>, vector<1x128x256xbf16>
    %46 = vector.shape_cast %45 : vector<1x128x256xbf16> to vector<128x256xbf16>
    %cst_34 = arith.constant dense<0.000000e+00> : vector<32x256xf32>
    %47 = tpu.matmul %44, %46, %cst_34 {dimension_numbers = #tpu.dot_dimension_numbers<[1], [0], [0], [1], [0, 0, 1, 1], [], []>} : vector<32x128xbf16>, vector<128x256xbf16>, vector<32x256xf32> -> vector<32x256xf32>
    %48 = arith.truncf %47 : vector<32x256xf32> to vector<32x256xbf16>
    %49 = arith.index_cast %43 : i32 to index
    %c0_35 = arith.constant 0 : index
    %50 = vector.load %arg14[%49, %c0_35] : memref<256x256xbf16, #tpu.memory_space<vmem>>, vector<32x256xbf16>
    tpu.vector_store %arg14[%49, %c0_35], %48 {strides = array<i32>} : memref<256x256xbf16, #tpu.memory_space<vmem>>, vector<32x256xbf16>,
    %c16_i32_36 = arith.constant 16 : i32
    %51 = arith.muli %41, %c16_i32_36 : i32
    %52 = tpu.assume_multiple %51, 16 : i32
    %c0_37 = arith.constant 0 : index
    %c0_38 = arith.constant 0 : index
    %53 = vector.load %arg2[%c0_37, %c0_38] : memref<16x128xbf16, #tpu.memory_space<vmem>>, vector<16x128xbf16>
    %c2_39 = arith.constant 2 : index
    %c0_40 = arith.constant 0 : index
    %c0_41 = arith.constant 0 : index
    %54 = vector.load %arg7[%c2_39, %c0_40, %c0_41] : memref<4x128x256xbf16, #tpu.memory_space<vmem>>, vector<1x128x256xbf16>
    %55 = vector.shape_cast %54 : vector<1x128x256xbf16> to vector<128x256xbf16>
    %cst_42 = arith.constant dense<0.000000e+00> : vector<16x256xf32>
    %56 = tpu.matmul %53, %55, %cst_42 {dimension_numbers = #tpu.dot_dimension_numbers<[1], [0], [0], [1], [0, 0, 1, 1], [], []>} : vector<16x128xbf16>, vector<128x256xbf16>, vector<16x256xf32> -> vector<16x256xf32>
    %57 = arith.truncf %56 : vector<16x256xf32> to vector<16x256xbf16>
    %58 = arith.index_cast %52 : i32 to index
    %c0_43 = arith.constant 0 : index
    %59 = vector.load %arg15[%58, %c0_43] : memref<128x256xbf16, #tpu.memory_space<vmem>>, vector<16x256xbf16>
    tpu.vector_store %arg15[%58, %c0_43], %57 {strides = array<i32>} : memref<128x256xbf16, #tpu.memory_space<vmem>>, vector<16x256xbf16>,
    %c4_i32_44 = arith.constant 4 : i32
    %60 = arith.muli %arg0, %c4_i32_44 : i32
    %c3_i32 = arith.constant 3 : i32
    %61 = arith.addi %60, %c3_i32 : i32
    %c32_i32_45 = arith.constant 32 : i32
    %62 = arith.muli %61, %c32_i32_45 : i32
    %63 = tpu.assume_multiple %62, 32 : i32
    %c0_46 = arith.constant 0 : index
    %c0_47 = arith.constant 0 : index
    %64 = vector.load %arg1[%c0_46, %c0_47] : memref<32x128xbf16, #tpu.memory_space<vmem>>, vector<32x128xbf16>
    %c3 = arith.constant 3 : index
    %c0_48 = arith.constant 0 : index
    %c0_49 = arith.constant 0 : index
    %65 = vector.load %arg6[%c3, %c0_48, %c0_49] : memref<4x128x256xbf16, #tpu.memory_space<vmem>>, vector<1x128x256xbf16>
    %66 = vector.shape_cast %65 : vector<1x128x256xbf16> to vector<128x256xbf16>
    %cst_50 = arith.constant dense<0.000000e+00> : vector<32x256xf32>
    %67 = tpu.matmul %64, %66, %cst_50 {dimension_numbers = #tpu.dot_dimension_numbers<[1], [0], [0], [1], [0, 0, 1, 1], [], []>} : vector<32x128xbf16>, vector<128x256xbf16>, vector<32x256xf32> -> vector<32x256xf32>
    %68 = arith.truncf %67 : vector<32x256xf32> to vector<32x256xbf16>
    %69 = arith.index_cast %63 : i32 to index
    %c0_51 = arith.constant 0 : index
    %70 = vector.load %arg14[%69, %c0_51] : memref<256x256xbf16, #tpu.memory_space<vmem>>, vector<32x256xbf16>
    tpu.vector_store %arg14[%69, %c0_51], %68 {strides = array<i32>} : memref<256x256xbf16, #tpu.memory_space<vmem>>, vector<32x256xbf16>,
    %c16_i32_52 = arith.constant 16 : i32
    %71 = arith.muli %61, %c16_i32_52 : i32
    %72 = tpu.assume_multiple %71, 16 : i32
    %c0_53 = arith.constant 0 : index
    %c0_54 = arith.constant 0 : index
    %73 = vector.load %arg2[%c0_53, %c0_54] : memref<16x128xbf16, #tpu.memory_space<vmem>>, vector<16x128xbf16>
    %c3_55 = arith.constant 3 : index
    %c0_56 = arith.constant 0 : index
    %c0_57 = arith.constant 0 : index
    %74 = vector.load %arg7[%c3_55, %c0_56, %c0_57] : memref<4x128x256xbf16, #tpu.memory_space<vmem>>, vector<1x128x256xbf16>
    %75 = vector.shape_cast %74 : vector<1x128x256xbf16> to vector<128x256xbf16>
    %cst_58 = arith.constant dense<0.000000e+00> : vector<16x256xf32>
    %76 = tpu.matmul %73, %75, %cst_58 {dimension_numbers = #tpu.dot_dimension_numbers<[1], [0], [0], [1], [0, 0, 1, 1], [], []>} : vector<16x128xbf16>, vector<128x256xbf16>, vector<16x256xf32> -> vector<16x256xf32>
    %77 = arith.truncf %76 : vector<16x256xf32> to vector<16x256xbf16>
    %78 = arith.index_cast %72 : i32 to index
    %c0_59 = arith.constant 0 : index
    %79 = vector.load %arg15[%78, %c0_59] : memref<128x256xbf16, #tpu.memory_space<vmem>>, vector<16x256xbf16>
    tpu.vector_store %arg15[%78, %c0_59], %77 {strides = array<i32>} : memref<128x256xbf16, #tpu.memory_space<vmem>>, vector<16x256xbf16>,
    %c1_i32_60 = arith.constant 1 : i32
    %80 = arith.cmpi eq, %arg0, %c1_i32_60 : i32
    %81 = arith.extui %80 : i1 to i32
    %c0_i32_61 = arith.constant 0 : i32
    %82 = arith.cmpi ne, %81, %c0_i32_61 : i32
    scf.if %82 {
      %c0_62 = arith.constant 0 : index
      %c0_63 = arith.constant 0 : index
      %83 = vector.load %arg10[%c0_62, %c0_63] : memref<8x256xf32, #tpu.memory_space<vmem>>, vector<1x256xf32>
      %c1_64 = arith.constant 1 : index
      %c0_65 = arith.constant 0 : index
      %84 = vector.load %arg10[%c1_64, %c0_65] : memref<8x256xf32, #tpu.memory_space<vmem>>, vector<1x256xf32>
      %c2_66 = arith.constant 2 : index
      %c0_67 = arith.constant 0 : index
      %85 = vector.load %arg10[%c2_66, %c0_67] : memref<8x256xf32, #tpu.memory_space<vmem>>, vector<1x256xf32>
      %c3_68 = arith.constant 3 : index
      %c0_69 = arith.constant 0 : index
      %86 = vector.load %arg10[%c3_68, %c0_69] : memref<8x256xf32, #tpu.memory_space<vmem>>, vector<1x256xf32>
      %c0_70 = arith.constant 0 : index
      %c0_71 = arith.constant 0 : index
      %87 = vector.load %arg3[%c0_70, %c0_71] : memref<32x256xbf16, #tpu.memory_space<vmem>>, vector<32x256xbf16>
      %c0_72 = arith.constant 0 : index
      %c0_73 = arith.constant 0 : index
      %88 = vector.load %arg14[%c0_72, %c0_73] : memref<256x256xbf16, #tpu.memory_space<vmem>>, vector<256x256xbf16>
      %cst_74 = arith.constant dense<0.000000e+00> : vector<32x256xf32>
      %89 = tpu.matmul %87, %88, %cst_74 {dimension_numbers = #tpu.dot_dimension_numbers<[1], [0], [0], [1], [0, 0, 1, 1], [], []>} : vector<32x256xbf16>, vector<256x256xbf16>, vector<32x256xf32> -> vector<32x256xf32>
      %c0_75 = arith.constant 0 : index
      %c0_76 = arith.constant 0 : index
      %90 = vector.load %arg1[%c0_75, %c0_76] : memref<32x128xbf16, #tpu.memory_space<vmem>>, vector<32x128xbf16>
      %c0_77 = arith.constant 0 : index
      %c0_78 = arith.constant 0 : index
      %91 = vector.load %arg8[%c0_77, %c0_78] : memref<128x256xbf16, #tpu.memory_space<vmem>>, vector<128x256xbf16>
      %cst_79 = arith.constant dense<0.000000e+00> : vector<32x256xf32>
      %92 = tpu.matmul %90, %91, %cst_79 {dimension_numbers = #tpu.dot_dimension_numbers<[1], [0], [0], [1], [0, 0, 1, 1], [], []>} : vector<32x128xbf16>, vector<128x256xbf16>, vector<32x256xf32> -> vector<32x256xf32>
      %93 = arith.addf %89, %92 : vector<32x256xf32>
      %94 = vector.broadcast %83 : vector<1x256xf32> to vector<32x256xf32>
      %95 = arith.addf %93, %94 : vector<32x256xf32>
      %cst_80 = arith.constant 0.000000e+00 : f32
      %96 = vector.broadcast %cst_80 : f32 to vector<32x256xf32>
      %97 = arith.maximumf %95, %96 : vector<32x256xf32>
      %98 = arith.truncf %97 : vector<32x256xf32> to vector<32x256xbf16>
      %c0_81 = arith.constant 0 : index
      %c0_82 = arith.constant 0 : index
      %99 = vector.load %arg11[%c0_81, %c0_82] : memref<32x256xbf16, #tpu.memory_space<vmem>>, vector<32x256xbf16>
      tpu.vector_store %arg11[%c0_81, %c0_82], %98 {strides = array<i32>} : memref<32x256xbf16, #tpu.memory_space<vmem>>, vector<32x256xbf16>,
      %c0_83 = arith.constant 0 : index
      %c0_84 = arith.constant 0 : index
      %100 = vector.load %arg4[%c0_83, %c0_84] : memref<16x128xbf16, #tpu.memory_space<vmem>>, vector<16x128xbf16>
      %c0_85 = arith.constant 0 : index
      %c0_86 = arith.constant 0 : index
      %101 = vector.load %arg15[%c0_85, %c0_86] : memref<128x256xbf16, #tpu.memory_space<vmem>>, vector<128x256xbf16>
      %cst_87 = arith.constant dense<0.000000e+00> : vector<16x256xf32>
      %102 = tpu.matmul %100, %101, %cst_87 {dimension_numbers = #tpu.dot_dimension_numbers<[1], [0], [0], [1], [0, 0, 1, 1], [], []>} : vector<16x128xbf16>, vector<128x256xbf16>, vector<16x256xf32> -> vector<16x256xf32>
      %c0_88 = arith.constant 0 : index
      %c0_89 = arith.constant 0 : index
      %103 = vector.load %arg2[%c0_88, %c0_89] : memref<16x128xbf16, #tpu.memory_space<vmem>>, vector<16x128xbf16>
      %c0_90 = arith.constant 0 : index
      %c0_91 = arith.constant 0 : index
      %104 = vector.load %arg9[%c0_90, %c0_91] : memref<128x256xbf16, #tpu.memory_space<vmem>>, vector<128x256xbf16>
      %cst_92 = arith.constant dense<0.000000e+00> : vector<16x256xf32>
      %105 = tpu.matmul %103, %104, %cst_92 {dimension_numbers = #tpu.dot_dimension_numbers<[1], [0], [0], [1], [0, 0, 1, 1], [], []>} : vector<16x128xbf16>, vector<128x256xbf16>, vector<16x256xf32> -> vector<16x256xf32>
      %106 = arith.addf %102, %105 : vector<16x256xf32>
      %c0_93 = arith.constant 0 : index
      %c0_94 = arith.constant 0 : index
      %107 = vector.load %arg5[%c0_93, %c0_94] : memref<16x32xbf16, #tpu.memory_space<vmem>>, vector<16x32xbf16>
      %cst_95 = arith.constant dense<0.000000e+00> : vector<16x256xf32>
      %108 = tpu.matmul %107, %98, %cst_95 {dimension_numbers = #tpu.dot_dimension_numbers<[1], [0], [0], [1], [0, 0, 1, 1], [], []>} : vector<16x32xbf16>, vector<32x256xbf16>, vector<16x256xf32> -> vector<16x256xf32>
      %109 = arith.addf %106, %108 : vector<16x256xf32>
      %110 = vector.broadcast %84 : vector<1x256xf32> to vector<16x256xf32>
      %111 = arith.addf %109, %110 : vector<16x256xf32>
      %cst_96 = arith.constant dense<0.000000e+00> : vector<256xf32>
      %112 = vector.multi_reduction <add>, %111, %cst_96 [0] : vector<16x256xf32> to vector<256xf32>
      %113 = vector.shape_cast %112 : vector<256xf32> to vector<1x256xf32>
      %cst_97 = arith.constant 6.250000e-02 : f32
      %114 = vector.broadcast %cst_97 : f32 to vector<1x256xf32>
      %115 = arith.mulf %113, %114 : vector<1x256xf32>
      %116 = arith.mulf %111, %111 : vector<16x256xf32>
      %cst_98 = arith.constant dense<0.000000e+00> : vector<256xf32>
      %117 = vector.multi_reduction <add>, %116, %cst_98 [0] : vector<16x256xf32> to vector<256xf32>
      %118 = vector.shape_cast %117 : vector<256xf32> to vector<1x256xf32>
      %cst_99 = arith.constant 6.250000e-02 : f32
      %119 = vector.broadcast %cst_99 : f32 to vector<1x256xf32>
      %120 = arith.mulf %118, %119 : vector<1x256xf32>
      %121 = arith.mulf %115, %115 : vector<1x256xf32>
      %122 = arith.subf %120, %121 : vector<1x256xf32>
      %123 = vector.broadcast %115 : vector<1x256xf32> to vector<16x256xf32>
      %124 = arith.subf %111, %123 : vector<16x256xf32>
      %125 = vector.broadcast %85 : vector<1x256xf32> to vector<16x256xf32>
      %126 = arith.mulf %125, %124 : vector<16x256xf32>
      %cst_100 = arith.constant 9.99999974E-6 : f32
      %127 = vector.broadcast %cst_100 : f32 to vector<1x256xf32>
      %128 = arith.addf %122, %127 : vector<1x256xf32>
      %129 = math.rsqrt %128 : vector<1x256xf32>
      %130 = vector.broadcast %129 : vector<1x256xf32> to vector<16x256xf32>
      %131 = arith.mulf %126, %130 : vector<16x256xf32>
      %132 = vector.broadcast %86 : vector<1x256xf32> to vector<16x256xf32>
      %133 = arith.addf %131, %132 : vector<16x256xf32>
      %cst_101 = arith.constant 0.000000e+00 : f32
      %134 = vector.broadcast %cst_101 : f32 to vector<16x256xf32>
      %135 = arith.maximumf %133, %134 : vector<16x256xf32>
      %136 = arith.truncf %135 : vector<16x256xf32> to vector<16x256xbf16>
      %c0_102 = arith.constant 0 : index
      %c0_103 = arith.constant 0 : index
      %137 = vector.load %arg12[%c0_102, %c0_103] : memref<16x256xbf16, #tpu.memory_space<vmem>>, vector<16x256xbf16>
      tpu.vector_store %arg12[%c0_102, %c0_103], %136 {strides = array<i32>} : memref<16x256xbf16, #tpu.memory_space<vmem>>, vector<16x256xbf16>,
      %138 = vector.extract_strided_slice %135 {offsets = [0, 0], sizes = [8, 256], strides = [1, 1]} : vector<16x256xf32> to vector<8x256xf32>
      %cst_104 = arith.constant dense<0xFF800000> : vector<256xf32>
      %139 = vector.multi_reduction <maximumf>, %138, %cst_104 [0] : vector<8x256xf32> to vector<256xf32>
      %140 = vector.shape_cast %139 : vector<256xf32> to vector<1x256xf32>
      %141 = vector.extract_strided_slice %135 {offsets = [8, 0], sizes = [8, 256], strides = [1, 1]} : vector<16x256xf32> to vector<8x256xf32>
      %cst_105 = arith.constant dense<0xFF800000> : vector<256xf32>
      %142 = vector.multi_reduction <maximumf>, %141, %cst_105 [0] : vector<8x256xf32> to vector<256xf32>
      %143 = vector.shape_cast %142 : vector<256xf32> to vector<1x256xf32>
      %144 = tpu.concatenate %140, %143 in 0 : vector<1x256xf32>, vector<1x256xf32> -> vector<2x256xf32>
      %c0_106 = arith.constant 0 : index
      %c0_107 = arith.constant 0 : index
      %145 = vector.load %arg13[%c0_106, %c0_107] : memref<2x256xf32, #tpu.memory_space<vmem>>, vector<2x256xf32>
      tpu.vector_store %arg13[%c0_106, %c0_107], %144 {strides = array<i32>} : memref<2x256xf32, #tpu.memory_space<vmem>>, vector<2x256xf32>,
    } else {
    }
    return
  }
  func.func @transform_0(%arg0: i32) -> (i32, i32) {
    %c0_i32 = arith.constant 0 : i32
    %c0_i32_0 = arith.constant 0 : i32
    %c0_i32_1 = arith.constant 0 : i32
    return %c0_i32, %c0_i32_0 : i32, i32
  }
  func.func @transform_1(%arg0: i32) -> (i32, i32) {
    %c0_i32 = arith.constant 0 : i32
    %c0_i32_0 = arith.constant 0 : i32
    %c0_i32_1 = arith.constant 0 : i32
    return %c0_i32, %c0_i32_0 : i32, i32
  }
  func.func @transform_2(%arg0: i32) -> (i32, i32) {
    %c0_i32 = arith.constant 0 : i32
    %c0_i32_0 = arith.constant 0 : i32
    %c0_i32_1 = arith.constant 0 : i32
    return %c0_i32, %c0_i32_0 : i32, i32
  }
  func.func @transform_3(%arg0: i32) -> (i32, i32) {
    %c0_i32 = arith.constant 0 : i32
    %c0_i32_0 = arith.constant 0 : i32
    %c0_i32_1 = arith.constant 0 : i32
    return %c0_i32, %c0_i32_0 : i32, i32
  }
  func.func @transform_4(%arg0: i32) -> (i32, i32) {
    %c0_i32 = arith.constant 0 : i32
    %c0_i32_0 = arith.constant 0 : i32
    %c0_i32_1 = arith.constant 0 : i32
    return %c0_i32, %c0_i32_0 : i32, i32
  }
  func.func @transform_5(%arg0: i32) -> (i32, i32, i32) {
    %c0_i32 = arith.constant 0 : i32
    %c0_i32_0 = arith.constant 0 : i32
    %c0_i32_1 = arith.constant 0 : i32
    return %arg0, %c0_i32, %c0_i32_0 : i32, i32, i32
  }
  func.func @transform_6(%arg0: i32) -> (i32, i32, i32) {
    %c0_i32 = arith.constant 0 : i32
    %c0_i32_0 = arith.constant 0 : i32
    %c0_i32_1 = arith.constant 0 : i32
    return %arg0, %c0_i32, %c0_i32_0 : i32, i32, i32
  }
  func.func @transform_7(%arg0: i32) -> (i32, i32) {
    %c0_i32 = arith.constant 0 : i32
    %c0_i32_0 = arith.constant 0 : i32
    %c0_i32_1 = arith.constant 0 : i32
    return %c0_i32, %c0_i32_0 : i32, i32
  }
  func.func @transform_8(%arg0: i32) -> (i32, i32) {
    %c0_i32 = arith.constant 0 : i32
    %c0_i32_0 = arith.constant 0 : i32
    %c0_i32_1 = arith.constant 0 : i32
    return %c0_i32, %c0_i32_0 : i32, i32
  }
  func.func @transform_9(%arg0: i32) -> (i32, i32) {
    %c0_i32 = arith.constant 0 : i32
    %c0_i32_0 = arith.constant 0 : i32
    %c0_i32_1 = arith.constant 0 : i32
    return %c0_i32, %c0_i32_0 : i32, i32
  }
  func.func @transform_10(%arg0: i32) -> (i32, i32) {
    %c0_i32 = arith.constant 0 : i32
    %c0_i32_0 = arith.constant 0 : i32
    %c0_i32_1 = arith.constant 0 : i32
    return %c0_i32, %c0_i32_0 : i32, i32
  }
  func.func @transform_11(%arg0: i32) -> (i32, i32) {
    %c0_i32 = arith.constant 0 : i32
    %c0_i32_0 = arith.constant 0 : i32
    %c0_i32_1 = arith.constant 0 : i32
    return %c0_i32, %c0_i32_0 : i32, i32
  }
  func.func @transform_12(%arg0: i32) -> (i32, i32) {
    %c0_i32 = arith.constant 0 : i32
    %c0_i32_0 = arith.constant 0 : i32
    %c0_i32_1 = arith.constant 0 : i32
    return %c0_i32, %c0_i32_0 : i32, i32
  }
}

</mosaic_0001>

<bundles_post_ra>
// kernel: tpu_custom_call.1
= control target key start
LH: loop header
LB: loop body
LE: loop exit
PB: predicated region body
PF: predicated region fallthrough
CT: control target
= control target key end

     0   :  { %s5153_s0 = inlined_call_operand.hbm [shape: bf16[32,128], index: 0, kind: input, shape index: {}]   ;;  %s5154_s1 = inlined_call_operand.hbm [shape: bf16[16,128], index: 1, kind: input, shape index: {}]   ;;  %s5155_s2 = inlined_call_operand.hbm [shape: bf16[32,256], index: 2, kind: input, shape index: {}]   ;;  %s5156_s3 = inlined_call_operand.hbm [shape: bf16[16,128], index: 3, kind: input, shape index: {}]   ;;  %s5157_s4 = inlined_call_operand.hbm [shape: bf16[16,32], index: 4, kind: input, shape index: {}]   ;;  %s5158_s5 = inlined_call_operand.hbm [shape: bf16[8,128,256], index: 5, kind: input, shape index: {}]   ;;  %s5159_s6 = inlined_call_operand.hbm [shape: bf16[8,128,256], index: 6, kind: input, shape index: {}]   ;;  %s5160_s7 = inlined_call_operand.hbm [shape: bf16[128,256], index: 7, kind: input, shape index: {}]   ;;  %s5161_s8 = inlined_call_operand.hbm [shape: bf16[128,256], index: 8, kind: input, shape index: {}]   ;;  %s5162_s9 = inlined_call_operand.vmem [shape: f32[8,256], index: 9, kind: input, shape index: {}]   ;;  %s5163_s10 = inlined_call_operand.hbm [shape: bf16[32,256], index: 10, kind: output, shape index: {0}]   ;;  %s5164_s11 = inlined_call_operand.hbm [shape: bf16[16,256], index: 11, kind: output, shape index: {1}]   ;;  %s5165_s12 = inlined_call_operand.hbm [shape: f32[2,256], index: 12, kind: output, shape index: {2}]  }
   0x1   :  { %5183 = sst [smem:[#allocation33_spill]] %s5154_s1 }
   0x2   :  { %5184 = sst [smem:[#allocation34_spill]] %s5156_s3 }
   0x3   :  { %5185 = sst [smem:[#allocation35_spill]] %s5158_s5 }
   0x4   :  { %5186 = sst [smem:[#allocation36_spill]] %s5160_s7 }
   0x5   :  { %5187 = sst [smem:[#allocation37_spill]] %s5165_s12 }
   0x6   :  { %18 = vsyncpa [#allocation5], 0 }
   0x7   :  { %19 = vsyncpa [#allocation8], 0 }
   0x8   :  { %20 = vsyncpa [#allocation11], 0 }
   0x9   :  { %21 = vsyncpa [#allocation14], 0 }
   0xa   :  { %23 = vsyncpa [#allocation14 + $0x1], 0 }
   0xb   :  { %24 = vsyncpa [#allocation17], 0 }
   0xc   :  { %25 = vsyncpa [#allocation6], 0 }
   0xd   :  { %26 = vsyncpa [#allocation21], 0  ;;  %s4669_s21 = smov 0   ;;  %s4671_s22 = smov 0  }
   0xe   :  { %s4673_s23 = smov 0   ;;  %s4675_s24 = smov 0  }
   0xf LB: > { %5188 = sst [smem:[#allocation30_spill]] %s4578_s23  ;;  %s4690_s25 = sadd.s32 4294967295, %s4582_s24   ;;  %s4582_s24 = sphi %s4675_s24, %s5217_s24   ;;  %s4578_s23 = sphi %s4673_s23, %s5219_s23   ;;  %s4574_s22 = sphi %s4671_s22, %s5221_s22   ;;  %s4570_s21 = sphi %s4669_s21, %s5220_s21  }
  0x10   : > { %p3250_p0 = scmp.ge.s32.totalorder %s4582_s24, 1  ;;  %p5175_p1 = scmp.eq.s32.totalorder %s4690_s25, 0 }
  0x11   : > { %p320_p2 = scmp.lt.s32.totalorder %s4582_s24, 3  ;;  %s4584_s27 = smov [#allocation7]  }
  0x12   : > { %s345_s28 = sshll.u32 %s4584_s27, 4  ;;  %s4585_s29 = smov [#allocation10]   ;;  %s346_s28 = int_to_ptr.vmem [resolvable:$true] %s345_s28 }
  0x13   : > { %p4695_p3 = pnand %p3250_p0, %p320_p2  ;;  %s371_s30 = sshll.u32 %s4585_s29, 4  ;;  %s372_s30 = int_to_ptr.vmem [resolvable:$true] %s371_s30 }
  0x14   : > { %s4586_s14 = smov [#allocation16]   ;;  %s4225_s17 = scalar_lea.vmem %s346_s28, 128 }
  0x15   : > { %s5189_s26 = scalar_select %p4695_p3, 1, 0 }
  0x16   : > { %p3775_p4 = pneg %p4695_p3  ;;  %s397_s15 = sshll.u32 %s4586_s14, 4  ;;  %s398_s15 = int_to_ptr.vmem [resolvable:$true] %s397_s15 }
  0x17   : > { %p4226_p7 = scmp.ne.s32.totalorder %s346_s28, %s4225_s17  ;;  %p4233_p10 = scmp.lt.s32.totalorder %s346_s28, %s346_s28 }
  0x18   : > { %p4703_p5 = pnand %p3775_p4, %p5175_p1  ;;  %p4234_p11 = scmp.lt.s32.totalorder %s4225_s17, %s4225_s17 }
  0x1a   : > { %s5190_s13 = scalar_select %p4703_p5, 1, 0 }
  0x1b   : > { %p4709_p6 = pneg %p4703_p5  ;;  %p4235_p12 = por %p4234_p11, %p4233_p10 }
  0x1d   : > { %p4228_p8 = pnand %p4226_p7, %p4709_p6 }
  0x1f   : > { %p4229_p9 = pneg %p4228_p8 }
  0x21   : > { %p4236_p13 = pnand %p4235_p12, %p4229_p9 }
  0x23   : > { %4239 = shalt.err (!%p4236_p13)
}
  0x24   : > { %s5166_s18 = smov 64   ;;  %s5168_s19 = smov 4  }
  0x25   : > { %s5192_s1 = sld [smem:[#allocation33_spill]]  ;;  %s4251_s29 = scalar_lea.vmem %s372_s30, 128 }
  0x26   : > { %p4252_p0 = scmp.ne.s32.totalorder %s372_s30, %s4251_s29  ;;  %p4259_p7 = scmp.lt.s32.totalorder %s372_s30, %s372_s30 }
  0x27   : > { %p4260_p8 = scmp.lt.s32.totalorder %s4251_s29, %s4251_s29 }
  0x28   : > { %p4254_p2 = pnand %p4252_p0, %p4709_p6 }
  0x29   : > { %p4261_p9 = por %p4260_p8, %p4259_p7 }
  0x2a   : > { %p4255_p4 = pneg %p4254_p2 }
  0x2b   : > { %3781 = dma.hbm_to_vmem [thread:$0]  (!%p4703_p5), %s5192_s1, 128, %s346_s28, [#allocation8], %s5166_s18, %s5166_s18, %s5168_s19  }
  0x2c   : > { %p4262_p10 = pnand %p4261_p9, %p4255_p4 }
  0x2e   : > { %4265 = shalt.err (!%p4262_p10)
}
  0x2f   : > { %s5193_s3 = sld [smem:[#allocation34_spill]]  ;;  %s4277_s28 = scalar_lea.vmem %s398_s15, 2048 }
  0x30   : > { %p4278_p11 = scmp.ne.s32.totalorder %s398_s15, %s4277_s28  ;;  %p4285_p0 = scmp.lt.s32.totalorder %s398_s15, %s398_s15 }
  0x31   : > { %p4286_p2 = scmp.lt.s32.totalorder %s4277_s28, %s4277_s28 }
  0x32   : > { %p4280_p12 = pnand %p4278_p11, %p4709_p6 }
  0x33   : > { %p4287_p4 = por %p4286_p2, %p4285_p0 }
  0x34   : > { %p4281_p13 = pneg %p4280_p12 }
  0x35   : > { %3787 = dma.hbm_to_vmem [thread:$0]  (!%p4703_p5), %s5193_s3, 128, %s372_s30, [#allocation11], %s5166_s18, %s5166_s18, %s5168_s19  }
  0x36   : > { %p4288_p7 = pnand %p4287_p4, %p4281_p13 }
  0x38   : > { %4291 = shalt.err (!%p4288_p7)
}
  0x39   : > { %s5170_s20 = smov 128   ;;  %s5172_s30 = smov 8  }
  0x3a   : > { %s5194_s7 = sld [smem:[#allocation36_spill]]  ;;  %s4744_s14 = sadd.s32 1, %s4582_s24  }
  0x3b   : > { %5195 = sst [smem:[#allocation31_spill]] %s4744_s14  ;;  %s141_s17 = ssub.s32 %s4582_s24, %s4744_s14 }
  0x3c   : > { %s144_s28 = sadd.s32 1, %s4578_s23  ;;  %p142_p8 = scmp.eq.s32.totalorder %s141_s17, 0 }
  0x3d   : > { %p151_p9 = scmp.ne.s32.totalorder %s4578_s23, %s4574_s22  ;;  %p152_p10 = scmp.eq.s32.totalorder %s4582_s24, 0 }
  0x3e   : > { %p157_p11 = scmp.ne.s32.totalorder %s4574_s22, %s4570_s21  ;;  %p3811_p0 = scmp.lt.s32.totalorder %s4582_s24, 2 }
  0x3f   : > { %s4755_s18 = scalar_select %p142_p8, %s4578_s23, %s144_s28  }
  0x40   : > { %3793 = dma.hbm_to_vmem [thread:$0]  (!%p4703_p5), %s5194_s7, 2048, %s398_s15, [#allocation17], %s5170_s20, %s5170_s20, %s5172_s30  }
  0x41   : > { %5196 = sst [smem:[#allocation32_spill]] %s4755_s18  ;;  %p153_p12 = por %p152_p10, %p151_p9 }
  0x42   : > { %p4759_p13 = por %p5175_p1, %p157_p11  ;;  %s427_s15 = sand.u32 1, %s4582_s24  }
  0x43   : > { %s429_s27 = sand.u32 1, %s4578_s23   ;;  %s5174_s20 = sshll.u32 %s4582_s24, 13 }
  0x44   : > { %s5197_s19 = scalar_select %p4759_p13, 1, 0 }
  0x45   : > { %s4766_s29 = sshll.u32 %s429_s27, 9  ;;  %s5198_s5 = sld [smem:[#allocation35_spill]] }
  0x46   : > { %s431_s28 = scalar_lea.vmem [#allocation13], %s4766_s29  ;;  %p4777_p2 = pnand %p3811_p0, %p153_p12 }
  0x47   : > { %s439_s1 = sshll.u32 %s431_s28, 4  ;;  %s4783_s27 = scalar_lea.sflag [#allocation14], %s427_s15  ;;  %s4781_s1 = int_to_ptr.vmem [resolvable:$true] %s439_s1 }
  0x48   : > { %p4294_p7 = pneg %p4777_p2 }
  0x4b   : > { %s4774_s21 = scalar_lea.hbm %s5198_s5, %s5174_s20  ;;  %s4297_s28 = scalar_lea.hbm %s5198_s5, 16384 }
  0x4c   : > { %s4292_s7 = scalar_lea.hbm %s4774_s21, 8192  ;;  %p4298_p10 = scmp.lt.s32.totalorder %s4774_s21, %s5198_s5 }
  0x4d   : > { %p4293_p4 = scmp.ne.s32.totalorder %s4774_s21, %s4292_s7  ;;  %p4299_p11 = scmp.lt.s32.totalorder %s4297_s28, %s4292_s7 }
  0x4f   : > { %p4295_p8 = pnand %p4294_p7, %p4293_p4  ;;  %p4300_p12 = por %p4299_p11, %p4298_p10 }
  0x51   : > { %p4296_p9 = pneg %p4295_p8 }
  0x53   : > { %p4301_p0 = pnand %p4300_p12, %p4296_p9 }
  0x55   : > { %4304 = shalt.err (!%p4301_p0)
}
  0x56   : > { %s4305_s15 = scalar_lea.vmem %s4781_s1, 8192  ;;  %s4591_s30 = smov [#allocation13]  }
  0x57   : > { %p4306_p1 = scmp.ne.s32.totalorder %s4781_s1, %s4305_s15  ;;  %s4310_s17 = sshll.u32 %s4591_s30, 4  ;;  %s4311_s17 = int_to_ptr.vmem [resolvable:$false] %s4310_s17 }
  0x58   : > { %s4312_s23 = scalar_lea.vmem %s4311_s17, 16384  ;;  %p4313_p13 = scmp.lt.s32.totalorder %s4781_s1, %s4311_s17 }
  0x59   : > { %p4308_p4 = pnand %p4306_p1, %p4294_p7  ;;  %p4314_p3 = scmp.lt.s32.totalorder %s4312_s23, %s4305_s15 }
  0x5b   : > { %p4309_p8 = pneg %p4308_p4  ;;  %p4315_p5 = por %p4314_p3, %p4313_p13 }
  0x5d   : > { %p4316_p10 = pnand %p4315_p5, %p4309_p8 }
  0x5f   : > { %4319 = shalt.err (!%p4316_p10)
}
  0x60   : > { %s5200_s7 = smov 8   ;;  %s5201_s18 = smov 128  }
  0x61   : > { %3800 = dma.hbm_to_vmem [thread:$0]  (!%p4777_p2), %s4774_s21, 8192, %s4781_s1, %s4783_s27, %s5201_s18, %s5201_s18, %s5200_s7  }
  0x62   : > { %s5202_s20 = sshll.u32 %s4582_s24, 13  ;;  %s453_s15 = scalar_lea.vmem [#allocation15], %s4766_s29 }
  0x63   : > { %s4818_s23 = scalar_lea.hbm %s5159_s6, %s5202_s20  ;;  %s4821_s17 = sshll.u32 %s453_s15, 4  ;;  %s4854_s17 = int_to_ptr.vmem [resolvable:$true] %s4821_s17 }
  0x64   : > { %s4592_s5 = smov [#allocation4]  }
  0x65   : > { %s332_s14 = sshll.u32 %s4592_s5, 4  ;;  %s333_s14 = int_to_ptr.vmem [resolvable:$true] %s332_s14 }
  0x66   : > { %s4331_s12 = scalar_lea.vmem %s333_s14, 256  ;;  %p4339_p13 = scmp.lt.s32.totalorder %s333_s14, %s333_s14 }
  0x67   : > { %p4332_p1 = scmp.ne.s32.totalorder %s333_s14, %s4331_s12  ;;  %p4340_p9 = scmp.lt.s32.totalorder %s4331_s12, %s4331_s12 }
  0x69   : > { %p4334_p3 = pnand %p4332_p1, %p4709_p6  ;;  %p4341_p11 = por %p4340_p9, %p4339_p13 }
  0x6b   : > { %p4335_p5 = pneg %p4334_p3 }
  0x6d   : > { %p4342_p12 = pnand %p4341_p11, %p4335_p5 }
  0x6f   : > { %4345 = shalt.err (!%p4342_p12)
}
  0x70   : > { %p5203_p0 = scmp.ne.s32.totalorder %s5190_s13, 0  ;;  %s5204_s1 = smov 4  }
  0x71   : > { %s5205_s24 = smov 64   ;;  %s4593_s5 = smov [#allocation9]  }
  0x72   : > { %3778 = dma.hbm_to_vmem [thread:$0]  (!%p5203_p0), %s5153_s0, 256, %s333_s14, [#allocation5], %s5205_s24, %s5205_s24, %s5204_s1  }
  0x73   : > { %s358_s20 = sshll.u32 %s4593_s5, 4  ;;  %s4594_s28 = smov [#allocation12]   ;;  %s359_s20 = int_to_ptr.vmem [resolvable:$true] %s358_s20 }
  0x74   : > { %s384_s30 = sshll.u32 %s4594_s28, 4  ;;  %s4357_s15 = scalar_lea.vmem %s359_s20, 512  ;;  %s385_s30 = int_to_ptr.vmem [resolvable:$true] %s384_s30 }
  0x75   : > { %p4358_p4 = scmp.ne.s32.totalorder %s359_s20, %s4357_s15  ;;  %p4365_p1 = scmp.lt.s32.totalorder %s359_s20, %s359_s20 }
  0x76   : > { %p4366_p3 = scmp.lt.s32.totalorder %s4357_s15, %s4357_s15 }
  0x77   : > { %p4360_p8 = pnand %p4358_p4, %p4709_p6 }
  0x78   : > { %p4367_p5 = por %p4366_p3, %p4365_p1 }
  0x79   : > { %p4361_p10 = pneg %p4360_p8 }
  0x7b   : > { %p4368_p13 = pnand %p4367_p5, %p4361_p10 }
  0x7d   : > { %4371 = shalt.err (!%p4368_p13)
}
  0x7e   : > { %3784 = dma.hbm_to_vmem [thread:$0]  (!%p5203_p0), %s5155_s2, 512, %s359_s20, [#allocation8], %s5201_s18, %s5201_s18, %s5200_s7  }
  0x7f   : > { %s4383_s29 = scalar_lea.vmem %s385_s30, 128  ;;  %p4391_p4 = scmp.lt.s32.totalorder %s385_s30, %s385_s30 }
  0x80   : > { %p4384_p9 = scmp.ne.s32.totalorder %s385_s30, %s4383_s29  ;;  %p4392_p8 = scmp.lt.s32.totalorder %s4383_s29, %s4383_s29 }
  0x82   : > { %p4386_p11 = pnand %p4384_p9, %p4709_p6  ;;  %p4393_p10 = por %p4392_p8, %p4391_p4 }
  0x84   : > { %p4387_p12 = pneg %p4386_p11 }
  0x86   : > { %p4394_p1 = pnand %p4393_p10, %p4387_p12 }
  0x88   : > { %4397 = shalt.err (!%p4394_p1)
}
  0x89   : > { %3790 = dma.hbm_to_vmem [thread:$0]  (!%p5203_p0), %s5157_s4, 128, %s385_s30, [#allocation11], %s5205_s24, %s5205_s24, %s5204_s1  }
  0x8a   : > { %s4595_s20 = smov [#allocation18]  }
  0x8b   : > { %s410_s28 = sshll.u32 %s4595_s20, 4  ;;  %s411_s28 = int_to_ptr.vmem [resolvable:$true] %s410_s28 }
  0x8c   : > { %s4409_s15 = scalar_lea.vmem %s411_s28, 2048  ;;  %p4417_p9 = scmp.lt.s32.totalorder %s411_s28, %s411_s28 }
  0x8d   : > { %p4410_p3 = scmp.ne.s32.totalorder %s411_s28, %s4409_s15  ;;  %p4418_p11 = scmp.lt.s32.totalorder %s4409_s15, %s4409_s15 }
  0x8f   : > { %p4412_p5 = pnand %p4410_p3, %p4709_p6  ;;  %p4419_p12 = por %p4418_p11, %p4417_p9 }
  0x91   : > { %p4413_p13 = pneg %p4412_p5 }
  0x93   : > { %p4420_p4 = pnand %p4419_p12, %p4413_p13 }
  0x95   : > { %4423 = shalt.err (!%p4420_p4)
}
  0x96   : > { %3796 = dma.hbm_to_vmem [thread:$0]  (!%p5203_p0), %s5161_s8, 2048, %s411_s28, [#allocation17], %s5201_s18, %s5201_s18, %s5200_s7  }
  0x97   : > { %s4424_s16 = scalar_lea.hbm %s4818_s23, 8192  ;;  %s4429_s13 = scalar_lea.hbm %s5159_s6, 16384 }
  0x98   : > { %p4425_p6 = scmp.ne.s32.totalorder %s4818_s23, %s4424_s16  ;;  %p4430_p1 = scmp.lt.s32.totalorder %s4818_s23, %s5159_s6 }
  0x99   : > { %p4431_p3 = scmp.lt.s32.totalorder %s4429_s13, %s4424_s16 }
  0x9a   : > { %p4427_p8 = pnand %p4425_p6, %p4294_p7 }
  0x9b   : > { %p4432_p5 = por %p4431_p3, %p4430_p1 }
  0x9c   : > { %p4428_p10 = pneg %p4427_p8 }
  0x9e   : > { %p4433_p13 = pnand %p4432_p5, %p4428_p10 }
  0xa0   : > { %4436 = shalt.err (!%p4433_p13)
}
  0xa1   : > { %s4437_s21 = scalar_lea.vmem %s4854_s17, 8192  ;;  %s4596_s5 = smov [#allocation15]  }
  0xa2   : > { %p4438_p0 = scmp.ne.s32.totalorder %s4854_s17, %s4437_s21  ;;  %s4442_s20 = sshll.u32 %s4596_s5, 4  ;;  %s4443_s20 = int_to_ptr.vmem [resolvable:$false] %s4442_s20 }
  0xa3   : > { %s4444_s28 = scalar_lea.vmem %s4443_s20, 16384  ;;  %p4445_p12 = scmp.lt.s32.totalorder %s4854_s17, %s4443_s20 }
  0xa4   : > { %p4440_p9 = pnand %p4438_p0, %p4294_p7  ;;  %p4446_p4 = scmp.lt.s32.totalorder %s4444_s28, %s4437_s21 }
  0xa6   : > { %p4441_p11 = pneg %p4440_p9  ;;  %p4447_p6 = por %p4446_p4, %p4445_p12 }
  0xa8   : > { %p4448_p8 = pnand %p4447_p6, %p4441_p11 }
  0xaa   : > { %4451 = shalt.err (!%p4448_p8)
}
  0xab   : > { %3803 = dma.hbm_to_vmem [thread:$0]  (!%p4777_p2), %s4818_s23, 8192, %s4854_s17, %s4783_s27, %s5201_s18, %s5201_s18, %s5200_s7  }
  0xac   : > { %p5206_p7 = scmp.ne.s32.totalorder %s5189_s26, 0 }
  0xad   : > { %p5207_p10 = scmp.eq.s32.totalorder (!%p5206_p7), %s4690_s25, 0 }
  0xae   : > { %473 = sbr.rel (%p5206_p7) target bundleno = 1139 (0x473), region = 60 }
  0xb3   : > { %4541 = dma.done.wait (%p5207_p10), [#allocation5], 256   ;;  %p5208_p1 = pmov %p5207_p10 }
  0xb5   : > { %4543 = vsyncadd (%p5208_p1), [#allocation5], 4294967040  ;;  %p5209_p3 = pmov %p5208_p1 }
  0xb6   : > { %p5210_p5 = pmov %p5208_p1 }
  0xb7   : > { %4545 = dma.done.wait (%p5209_p3), [#allocation8], 640  }
  0xb8   : > { %4547 = vsyncadd (%p5210_p5), [#allocation8], 4294966656  ;;  %p5211_p13 = pmov %p5208_p1 }
  0xb9   : > { %p5212_p2 = pmov %p5208_p1 }
  0xba   : > { %4549 = dma.done.wait (%p5211_p13), [#allocation11], 256  }
  0xbb   : > { %4551 = vsyncadd (%p5212_p2), [#allocation11], 4294967040  ;;  %s495_s3 = sand.u32 1, %s4690_s25   ;;  %s497_s26 = sand.u32 1, %s4574_s22  }
  0xbc   : > { %s3273_s27 = sshll.u32 %s497_s26, 9  ;;  %s496_s7 = scalar_lea.sflag [#allocation14], %s495_s3 }
  0xbd   : > { %s4908_s18 = scalar_lea.vmem [#allocation13], %s3273_s27  ;;  %p5213_p0 = scmp.ne.s32.totalorder %s5197_s19, 0 }
  0xbf   : > { %4553 = dma.done.wait (%p5213_p0), %s496_s7, 16384  }
  0xc0   : > { %4555 = vsyncadd (%p5213_p0), %s496_s7, 4294950912  ;;  %s4914_s23 = scalar_lea.vmem [#allocation15], %s3273_s27  ;;  %p5214_p9 = pmov %p5208_p1 }
  0xc1   : > { %p5215_p11 = pmov %p5208_p1 }
  0xc2   : > { %4557 = dma.done.wait (%p5214_p9), [#allocation17], 4096  }
  0xc3   : > { %4559 = vsyncadd (%p5215_p11), [#allocation17], 4294963200  ;;  %v4597_v0 = vmov 0   ;;  %v3875_v1 = vld [vmem:[%s4908_s18 + $0x74] ss:$8 sps:$4 sm:$0xff]   ;;  %v3930_v37 = vld [vmem:[#allocation7] sm:$0xff]  }
  0xc4   : > { %705 = vmatprep.mubr.bf16.mxu0 %v4597_v0  ;;  %896 = vmatprep.mubr.bf16.mxu1 %v4597_v0  ;;  %v3877_v2 = vld [vmem:[%s4908_s18 + $0x70] ss:$8 sps:$4 sm:$0xff]   ;;  %v3878_v3 = vld [vmem:[%s4914_s23 + $0x74] ss:$8 sps:$4 sm:$0xff]   ;;  %v3881_v5 = vld [vmem:[%s4908_s18 + $0x64] ss:$8 sps:$4 sm:$0xff]  }
  0xc5   : > { %673 = vmatprep.subr.bf16.mxu0 %v3875_v1  ;;  %v3880_v4 = vld [vmem:[%s4914_s23 + $0x70] ss:$8 sps:$4 sm:$0xff]   ;;  %v3883_v6 = vld [vmem:[%s4908_s18 + $0x60] ss:$8 sps:$4 sm:$0xff]   ;;  %864 = vmatprep.subr.bf16.mxu1 %v3878_v3  ;;  %v3884_v7 = vld [vmem:[%s4914_s23 + $0x64] ss:$8 sps:$4 sm:$0xff]  }
  0xc6   : > { %674 = vmatpush1.bf16.msra.mxu0 %v3877_v2  ;;  %865 = vmatpush1.bf16.msra.mxu1 %v3880_v4  ;;  %v3886_v8 = vld [vmem:[%s4914_s23 + $0x60] ss:$8 sps:$4 sm:$0xff]   ;;  %v3887_v9 = vld [vmem:[%s4908_s18 + $0x54] ss:$8 sps:$4 sm:$0xff]   ;;  %v3889_v10 = vld [vmem:[%s4908_s18 + $0x50] ss:$8 sps:$4 sm:$0xff]  }
  0xc7   : > { %675 = vmatprep.subr.bf16.mxu0 %v3881_v5  ;;  %866 = vmatprep.subr.bf16.mxu1 %v3884_v7  ;;  %v3890_v11 = vld [vmem:[%s4914_s23 + $0x54] ss:$8 sps:$4 sm:$0xff]   ;;  %v3893_v12 = vld [vmem:[%s4908_s18 + $0x44] ss:$8 sps:$4 sm:$0xff]   ;;  %v3892_v13 = vld [vmem:[%s4914_s23 + $0x50] ss:$8 sps:$4 sm:$0xff]  }
  0xc8   : > { %v3896_v14 = vld [vmem:[%s4914_s23 + $0x44] ss:$8 sps:$4 sm:$0xff]   ;;  %v3895_v15 = vld [vmem:[%s4908_s18 + $0x40] ss:$8 sps:$4 sm:$0xff]   ;;  %v3899_v16 = vld [vmem:[%s4908_s18 + $0x34] ss:$8 sps:$4 sm:$0xff]  }
  0xc9   : > { %v3898_v17 = vld [vmem:[%s4914_s23 + $0x40] ss:$8 sps:$4 sm:$0xff]   ;;  %v3902_v18 = vld [vmem:[%s4914_s23 + $0x34] ss:$8 sps:$4 sm:$0xff]   ;;  %v3901_v19 = vld [vmem:[%s4908_s18 + $0x30] ss:$8 sps:$4 sm:$0xff]  }
  0xca   : > { %676 = vmatpush1.bf16.msra.mxu0 %v3883_v6  ;;  %867 = vmatpush1.bf16.msra.mxu1 %v3886_v8  ;;  %v3905_v20 = vld [vmem:[%s4908_s18 + $0x24] ss:$8 sps:$4 sm:$0xff]   ;;  %v3904_v21 = vld [vmem:[%s4914_s23 + $0x30] ss:$8 sps:$4 sm:$0xff]   ;;  %v3907_v23 = vld [vmem:[%s4908_s18 + $0x20] ss:$8 sps:$4 sm:$0xff]  }
  0xcb   : > { %677 = vmatprep.subr.bf16.mxu0 %v3887_v9  ;;  %868 = vmatprep.subr.bf16.mxu1 %v3890_v11  ;;  %v3908_v22 = vld [vmem:[%s4914_s23 + $0x24] ss:$8 sps:$4 sm:$0xff]   ;;  %v3911_v24 = vld [vmem:[%s4908_s18 + $0x14] ss:$8 sps:$4 sm:$0xff]   ;;  %v3910_v25 = vld [vmem:[%s4914_s23 + $0x20] ss:$8 sps:$4 sm:$0xff]  }
  0xcc   : > { %v3914_v26 = vld [vmem:[%s4914_s23 + $0x14] ss:$8 sps:$4 sm:$0xff]   ;;  %v3913_v27 = vld [vmem:[%s4908_s18 + $0x10] ss:$8 sps:$4 sm:$0xff]   ;;  %v3917_v28 = vld [vmem:[%s4908_s18 + $0x4] ss:$8 sps:$4 sm:$0xff]  }
  0xcd   : > { %v3916_v29 = vld [vmem:[%s4914_s23 + $0x10] ss:$8 sps:$4 sm:$0xff]   ;;  %v3920_v30 = vld [vmem:[%s4914_s23 + $0x4] ss:$8 sps:$4 sm:$0xff]   ;;  %v3919_v31 = vld [vmem:[%s4908_s18] ss:$8 sps:$4 sm:$0xff]  }
  0xce   : > { %678 = vmatpush1.bf16.msra.mxu0 %v3889_v10  ;;  %869 = vmatpush1.bf16.msra.mxu1 %v3892_v13  ;;  %v3926_v32 = vld [vmem:[%s4908_s18 + $0xf4] ss:$8 sps:$4 sm:$0xff]   ;;  %v3922_v33 = vld [vmem:[%s4914_s23] ss:$8 sps:$4 sm:$0xff]   ;;  %v3924_v36 = vld [vmem:[%s4908_s18 + $0xf0] ss:$8 sps:$4 sm:$0xff]  }
  0xcf   : > { %679 = vmatprep.subr.bf16.mxu0 %v3893_v12  ;;  %870 = vmatprep.subr.bf16.mxu1 %v3896_v14  ;;  %v3923_v34 = vld [vmem:[#allocation4] sm:$0xff]   ;;  %v3933_v38 = vld [vmem:[%s4908_s18 + $0xe4] ss:$8 sps:$4 sm:$0xff]   ;;  %v3931_v41 = vld [vmem:[%s4908_s18 + $0xe0] ss:$8 sps:$4 sm:$0xff]   ;;  %s5061_s19 = sshll.u32 %s4690_s25, 7 }
  0xd0   : > { %v3929_v35 = vld [vmem:[%s4914_s23 + $0xf4] ss:$8 sps:$4 sm:$0xff]   ;;  %v3927_v39 = vld [vmem:[%s4914_s23 + $0xf0] ss:$8 sps:$4 sm:$0xff]   ;;  %v3936_v40 = vld [vmem:[%s4914_s23 + $0xe4] ss:$8 sps:$4 sm:$0xff]  }
  0xd1   : > { %v3939_v42 = vld [vmem:[%s4908_s18 + $0xd4] ss:$8 sps:$4 sm:$0xff]   ;;  %v3934_v43 = vld [vmem:[%s4914_s23 + $0xe0] ss:$8 sps:$4 sm:$0xff]   ;;  %v3937_v46 = vld [vmem:[%s4908_s18 + $0xd0] ss:$8 sps:$4 sm:$0xff]  }
  0xd2   : > { %680 = vmatpush1.bf16.msra.mxu0 %v3895_v15  ;;  %871 = vmatpush1.bf16.msra.mxu1 %v3898_v17  ;;  %v3942_v44 = vld [vmem:[%s4914_s23 + $0xd4] ss:$8 sps:$4 sm:$0xff]   ;;  %v3955_v45 = vld [vmem:[#allocation4 + $0x8] sm:$0xff]   ;;  %v3940_v48 = vld [vmem:[%s4914_s23 + $0xd0] ss:$8 sps:$4 sm:$0xff]   ;;  %s5064_s17 = sshll.u32 %s4690_s25, 6 }
  0xd3   : > { %681 = vmatprep.subr.bf16.mxu0 %v3899_v16  ;;  %872 = vmatprep.subr.bf16.mxu1 %v3902_v18  ;;  %v3945_v47 = vld [vmem:[%s4908_s18 + $0xc4] ss:$8 sps:$4 sm:$0xff]   ;;  %v3943_v50 = vld [vmem:[%s4908_s18 + $0xc0] ss:$8 sps:$4 sm:$0xff]   ;;  %v3951_v51 = vld [vmem:[%s4908_s18 + $0xb4] ss:$8 sps:$4 sm:$0xff]  }
  0xd4   : > { %v3948_v49 = vld [vmem:[%s4914_s23 + $0xc4] ss:$8 sps:$4 sm:$0xff]   ;;  %v3946_v52 = vld [vmem:[%s4914_s23 + $0xc0] ss:$8 sps:$4 sm:$0xff]   ;;  %v3954_v53 = vld [vmem:[%s4914_s23 + $0xb4] ss:$8 sps:$4 sm:$0xff]  }
  0xd5   : > { %v3949_v54 = vld [vmem:[%s4908_s18 + $0xb0] ss:$8 sps:$4 sm:$0xff]   ;;  %v3958_v55 = vld [vmem:[%s4908_s18 + $0xa4] ss:$8 sps:$4 sm:$0xff]   ;;  %v3956_v58 = vld [vmem:[%s4908_s18 + $0xa0] ss:$8 sps:$4 sm:$0xff]  }
  0xd6   : > { %682 = vmatpush1.bf16.msra.mxu0 %v3901_v19  ;;  %873 = vmatpush1.bf16.msra.mxu1 %v3904_v21  ;;  %v3952_v56 = vld [vmem:[%s4914_s23 + $0xb0] ss:$8 sps:$4 sm:$0xff]   ;;  %v3961_v57 = vld [vmem:[%s4914_s23 + $0xa4] ss:$8 sps:$4 sm:$0xff]   ;;  %v3964_v59 = vld [vmem:[%s4908_s18 + $0x94] ss:$8 sps:$4 sm:$0xff]  }
  0xd7   : > { %683 = vmatprep.subr.bf16.mxu0 %v3905_v20  ;;  %874 = vmatprep.subr.bf16.mxu1 %v3908_v22  ;;  %v3959_v60 = vld [vmem:[%s4914_s23 + $0xa0] ss:$8 sps:$4 sm:$0xff]   ;;  %v3967_v61 = vld [vmem:[%s4914_s23 + $0x94] ss:$8 sps:$4 sm:$0xff]   ;;  %v3962_v62 = vld [vmem:[%s4908_s18 + $0x90] ss:$8 sps:$4 sm:$0xff]  }
  0xd8   : > { %v3970_v63 = vld [vmem:[%s4908_s18 + $0x84] ss:$8 sps:$4 sm:$0xff]   ;;  %v3965_v1 = vld [vmem:[%s4914_s23 + $0x90] ss:$8 sps:$4 sm:$0xff]   ;;  %v3968_v3 = vld [vmem:[%s4908_s18 + $0x80] ss:$8 sps:$4 sm:$0xff]  }
  0xd9   : > { %v3973_v2 = vld [vmem:[%s4914_s23 + $0x84] ss:$8 sps:$4 sm:$0xff]   ;;  %v3971_v4 = vld [vmem:[%s4914_s23 + $0x80] ss:$8 sps:$4 sm:$0xff]   ;;  %v3977_v5 = vld [vmem:[%s4908_s18 + $0x174] ss:$8 sps:$4 sm:$0xff]  }
  0xda   : > { %684 = vmatpush1.bf16.msra.mxu0 %v3907_v23  ;;  %875 = vmatpush1.bf16.msra.mxu1 %v3910_v25  ;;  %v3974_v6 = vld [vmem:[#allocation4] sm:$0xff]   ;;  %v3981_v9 = vld [vmem:[#allocation7] sm:$0xff]   ;;  %v4006_v17 = vld [vmem:[#allocation4 + $0x8] sm:$0xff]   ;;  %s754_s15 = scalar_lea.vmem [#allocation2], %s5061_s19  ;;  %s923_s1 = scalar_lea.vmem [#allocation3], %s5064_s17 }
  0xdb   : > { %685 = vmatprep.subr.bf16.mxu0 %v3911_v24  ;;  %876 = vmatprep.subr.bf16.mxu1 %v3914_v26  ;;  %v3980_v7 = vld [vmem:[%s4914_s23 + $0x174] ss:$8 sps:$4 sm:$0xff]   ;;  %v3975_v8 = vld [vmem:[%s4908_s18 + $0x170] ss:$8 sps:$4 sm:$0xff]   ;;  %v3984_v10 = vld [vmem:[%s4908_s18 + $0x164] ss:$8 sps:$4 sm:$0xff]  }
  0xdc   : > { %v3978_v11 = vld [vmem:[%s4914_s23 + $0x170] ss:$8 sps:$4 sm:$0xff]   ;;  %v3987_v12 = vld [vmem:[%s4914_s23 + $0x164] ss:$8 sps:$4 sm:$0xff]   ;;  %v3982_v13 = vld [vmem:[%s4908_s18 + $0x160] ss:$8 sps:$4 sm:$0xff]  }
  0xdd   : > { %v3990_v14 = vld [vmem:[%s4908_s18 + $0x154] ss:$8 sps:$4 sm:$0xff]   ;;  %v3985_v15 = vld [vmem:[%s4914_s23 + $0x160] ss:$8 sps:$4 sm:$0xff]   ;;  %v3988_v18 = vld [vmem:[%s4908_s18 + $0x150] ss:$8 sps:$4 sm:$0xff]  }
  0xde   : > { %686 = vmatpush1.bf16.msra.mxu0 %v3913_v27  ;;  %877 = vmatpush1.bf16.msra.mxu1 %v3916_v29  ;;  %v3993_v16 = vld [vmem:[%s4914_s23 + $0x154] ss:$8 sps:$4 sm:$0xff]   ;;  %v3996_v19 = vld [vmem:[%s4908_s18 + $0x144] ss:$8 sps:$4 sm:$0xff]   ;;  %v3991_v20 = vld [vmem:[%s4914_s23 + $0x150] ss:$8 sps:$4 sm:$0xff]  }
  0xdf   : > { %687 = vmatprep.subr.bf16.mxu0 %v3917_v28  ;;  %878 = vmatprep.subr.bf16.mxu1 %v3920_v30  ;;  %v3999_v21 = vld [vmem:[%s4914_s23 + $0x144] ss:$8 sps:$4 sm:$0xff]   ;;  %v3994_v22 = vld [vmem:[%s4908_s18 + $0x140] ss:$8 sps:$4 sm:$0xff]   ;;  %v4002_v23 = vld [vmem:[%s4908_s18 + $0x134] ss:$8 sps:$4 sm:$0xff]  }
  0xe0   : > { %v3997_v24 = vld [vmem:[%s4914_s23 + $0x140] ss:$8 sps:$4 sm:$0xff]   ;;  %v4005_v25 = vld [vmem:[%s4914_s23 + $0x134] ss:$8 sps:$4 sm:$0xff]   ;;  %v4000_v26 = vld [vmem:[%s4908_s18 + $0x130] ss:$8 sps:$4 sm:$0xff]  }
  0xe1   : > { %v4009_v27 = vld [vmem:[%s4908_s18 + $0x124] ss:$8 sps:$4 sm:$0xff]   ;;  %v4003_v28 = vld [vmem:[%s4914_s23 + $0x130] ss:$8 sps:$4 sm:$0xff]   ;;  %v4007_v30 = vld [vmem:[%s4908_s18 + $0x120] ss:$8 sps:$4 sm:$0xff]  }
  0xe2   : > { %688 = vmatpush1.bf16.msra.mxu0 %v3919_v31  ;;  %879 = vmatpush1.bf16.msra.mxu1 %v3922_v33  ;;  %v4012_v29 = vld [vmem:[%s4914_s23 + $0x124] ss:$8 sps:$4 sm:$0xff]   ;;  %v4015_v31 = vld [vmem:[%s4908_s18 + $0x114] ss:$8 sps:$4 sm:$0xff]   ;;  %s3684_s24 = sadd.s32 32, %s5061_s19  ;;  %s3691_s16 = sadd.s32 16, %s5064_s17 }
  0xe3   : > { %1042 = vmatprep.subr.bf16.mxu0 %v3926_v32  ;;  %1234 = vmatprep.subr.bf16.mxu1 %v3929_v35  ;;  %v4010_v32 = vld [vmem:[%s4914_s23 + $0x120] ss:$8 sps:$4 sm:$0xff]   ;;  %v4018_v33 = vld [vmem:[%s4914_s23 + $0x114] ss:$8 sps:$4 sm:$0xff]   ;;  %v4021_v35 = vld [vmem:[%s4908_s18 + $0x104] ss:$8 sps:$4 sm:$0xff]  }
  0xe4   : > { %s1119_s30 = sshra.s32 %s3684_s24, 3  ;;  %s1289_s12 = sshra.s32 %s3691_s16, 3 }
  0xe5   : > { %706 = vmatmul.mubr.bf16.vlgmr.msra.gmra.mxu0 %v3923_v34  ;;  %897 = vmatmul.mubr.bf16.vlgmr.msra.gmra.mxu1 %v3930_v37  ;;  %v4013_v34 = vld [vmem:[%s4908_s18 + $0x110] ss:$8 sps:$4 sm:$0xff]   ;;  %v4024_v37 = vld [vmem:[%s4914_s23 + $0x104] ss:$8 sps:$4 sm:$0xff]   ;;  %s3689_s13 = sshll.u32 %s1119_s30, 3  ;;  %s3694_s14 = sshll.u32 %s1289_s12, 3 }
  0xe6   : > { %1043 = vmatpush1.bf16.msra.mxu0 %v3924_v36  ;;  %715 = vmatprep.mubr.bf16.mxu0 %v4597_v0  ;;  %v4016_v36 = vld [vmem:[%s4914_s23 + $0x110] ss:$8 sps:$4 sm:$0xff]   ;;  %s1123_s29 = scalar_lea.vmem [#allocation2], %s3689_s13  ;;  %s1293_s21 = scalar_lea.vmem [#allocation3], %s3694_s14 }
  0xe7   : > { %1044 = vmatprep.subr.bf16.mxu0 %v3933_v38  ;;  %1235 = vmatpush1.bf16.msra.mxu1 %v3927_v39  ;;  %v4019_v38 = vld [vmem:[%s4908_s18 + $0x100] ss:$8 sps:$4 sm:$0xff]   ;;  %s3696_s5 = sadd.s32 64, %s5061_s19  ;;  %s3703_s20 = sadd.s32 32, %s5064_s17 }
  0xe8   : > { %1266 = vmatprep.mubr.bf16.mxu1 %v4597_v0  ;;  %1236 = vmatprep.subr.bf16.mxu1 %v3936_v40  ;;  %v4022_v39 = vld [vmem:[%s4914_s23 + $0x100] ss:$8 sps:$4 sm:$0xff]   ;;  %v4025_v40 = vld [vmem:[#allocation4] sm:$0xff]   ;;  %s1488_s28 = sshra.s32 %s3696_s5, 3  ;;  %s1658_s3 = sshra.s32 %s3703_s20, 3 }
  0xe9   : > { %s3701_s26 = sshll.u32 %s1488_s28, 3  ;;  %s3706_s27 = sshll.u32 %s1658_s3, 3 }
  0xea   : > { %1045 = vmatpush1.bf16.msra.mxu0 %v3931_v41  ;;  %v4028_v41 = vld [vmem:[%s4908_s18 + $0x1f4] ss:$8 sps:$4 sm:$0xff]   ;;  %s1492_s7 = scalar_lea.vmem [#allocation2], %s3701_s26  ;;  %p3562_p12 = scmp.ne.s32.totalorder %s4690_s25, 1 }
  0xeb   : > { %1046 = vmatprep.subr.bf16.mxu0 %v3939_v42  ;;  %1237 = vmatpush1.bf16.msra.mxu1 %v3934_v43  ;;  %v4026_v42 = vld [vmem:[%s4908_s18 + $0x1f0] ss:$8 sps:$4 sm:$0xff]   ;;  %v4031_v43 = vld [vmem:[%s4914_s23 + $0x1f4] ss:$8 sps:$4 sm:$0xff]  }
  0xec   : > { %1238 = vmatprep.subr.bf16.mxu1 %v3942_v44  ;;  %v4032_v44 = vld [vmem:[#allocation7] sm:$0xff]  }
  0xed   : > { %716 = vmatmul.mubr.bf16.gmra.mxu0 %v3955_v45  ;;  %v4035_v45 = vld [vmem:[%s4908_s18 + $0x1e4] ss:$8 sps:$4 sm:$0xff]  }
  0xee   : > { %1047 = vmatpush1.bf16.msra.mxu0 %v3937_v46  ;;  %1074 = vmatprep.mubr.bf16.mxu0 %v4597_v0  ;;  %v4029_v46 = vld [vmem:[%s4914_s23 + $0x1f0] ss:$8 sps:$4 sm:$0xff]  }
  0xef   : > { %1048 = vmatprep.subr.bf16.mxu0 %v3945_v47  ;;  %1239 = vmatpush1.bf16.msra.mxu1 %v3940_v48  ;;  %v4038_v47 = vld [vmem:[%s4914_s23 + $0x1e4] ss:$8 sps:$4 sm:$0xff]   ;;  %v4033_v48 = vld [vmem:[%s4908_s18 + $0x1e0] ss:$8 sps:$4 sm:$0xff]  }
  0xf0   : > { %1240 = vmatprep.subr.bf16.mxu1 %v3948_v49  ;;  %v4041_v49 = vld [vmem:[%s4908_s18 + $0x1d4] ss:$8 sps:$4 sm:$0xff]  }
  0xf2   : > { %1049 = vmatpush1.bf16.msra.mxu0 %v3943_v50  ;;  %v4036_v50 = vld [vmem:[%s4914_s23 + $0x1e0] ss:$8 sps:$4 sm:$0xff]  }
  0xf3   : > { %1050 = vmatprep.subr.bf16.mxu0 %v3951_v51  ;;  %1241 = vmatpush1.bf16.msra.mxu1 %v3946_v52  ;;  %v4044_v51 = vld [vmem:[%s4914_s23 + $0x1d4] ss:$8 sps:$4 sm:$0xff]   ;;  %v4054_v52 = vld [vmem:[#allocation4 + $0x8] sm:$0xff]  }
  0xf4   : > { %1242 = vmatprep.subr.bf16.mxu1 %v3954_v53  ;;  %v4039_v53 = vld [vmem:[%s4908_s18 + $0x1d0] ss:$8 sps:$4 sm:$0xff]  }
  0xf6   : > { %1051 = vmatpush1.bf16.msra.mxu0 %v3949_v54  ;;  %v4047_v54 = vld [vmem:[%s4908_s18 + $0x1c4] ss:$8 sps:$4 sm:$0xff]  }
  0xf7   : > { %1052 = vmatprep.subr.bf16.mxu0 %v3958_v55  ;;  %1243 = vmatpush1.bf16.msra.mxu1 %v3952_v56  ;;  %v4042_v55 = vld [vmem:[%s4914_s23 + $0x1d0] ss:$8 sps:$4 sm:$0xff]   ;;  %v4050_v56 = vld [vmem:[%s4914_s23 + $0x1c4] ss:$8 sps:$4 sm:$0xff]  }
  0xf8   : > { %1244 = vmatprep.subr.bf16.mxu1 %v3961_v57  ;;  %v4045_v57 = vld [vmem:[%s4908_s18 + $0x1c0] ss:$8 sps:$4 sm:$0xff]  }
  0xfa   : > { %1053 = vmatpush1.bf16.msra.mxu0 %v3956_v58  ;;  %v4053_v58 = vld [vmem:[%s4908_s18 + $0x1b4] ss:$8 sps:$4 sm:$0xff]  }
  0xfb   : > { %1054 = vmatprep.subr.bf16.mxu0 %v3964_v59  ;;  %1245 = vmatpush1.bf16.msra.mxu1 %v3959_v60  ;;  %v4048_v59 = vld [vmem:[%s4914_s23 + $0x1c0] ss:$8 sps:$4 sm:$0xff]   ;;  %v4057_v60 = vld [vmem:[%s4914_s23 + $0x1b4] ss:$8 sps:$4 sm:$0xff]  }
  0xfc   : > { %1246 = vmatprep.subr.bf16.mxu1 %v3967_v61  ;;  %v4051_v61 = vld [vmem:[%s4908_s18 + $0x1b0] ss:$8 sps:$4 sm:$0xff]  }
  0xfe   : > { %1055 = vmatpush1.bf16.msra.mxu0 %v3962_v62  ;;  %v4060_v62 = vld [vmem:[%s4908_s18 + $0x1a4] ss:$8 sps:$4 sm:$0xff]  }
  0xff   : > { %1056 = vmatprep.subr.bf16.mxu0 %v3970_v63  ;;  %1247 = vmatpush1.bf16.msra.mxu1 %v3965_v1  ;;  %v4055_v63 = vld [vmem:[%s4914_s23 + $0x1b0] ss:$8 sps:$4 sm:$0xff]   ;;  %v4063_v1 = vld [vmem:[%s4914_s23 + $0x1a4] ss:$8 sps:$4 sm:$0xff]  }
 0x100   : > { %1248 = vmatprep.subr.bf16.mxu1 %v3973_v2  ;;  %v4058_v2 = vld [vmem:[%s4908_s18 + $0x1a0] ss:$8 sps:$4 sm:$0xff]  }
 0x102   : > { %1057 = vmatpush1.bf16.msra.mxu0 %v3968_v3  ;;  %v4066_v3 = vld [vmem:[%s4908_s18 + $0x194] ss:$8 sps:$4 sm:$0xff]  }
 0x103   : > { %1411 = vmatprep.subr.bf16.mxu0 %v3977_v5  ;;  %1249 = vmatpush1.bf16.msra.mxu1 %v3971_v4  ;;  %v4061_v4 = vld [vmem:[%s4914_s23 + $0x1a0] ss:$8 sps:$4 sm:$0xff]   ;;  %v4069_v5 = vld [vmem:[%s4914_s23 + $0x194] ss:$8 sps:$4 sm:$0xff]  }
 0x104   : > { %1603 = vmatprep.subr.bf16.mxu1 %v3980_v7  ;;  %v4072_v7 = vld [vmem:[%s4908_s18 + $0x184] ss:$8 sps:$4 sm:$0xff]  }
 0x105   : > { %1075 = vmatmul.mubr.bf16.vlgmr.msra.gmra.mxu0 %v3974_v6  ;;  %v4064_v6 = vld [vmem:[%s4908_s18 + $0x190] ss:$8 sps:$4 sm:$0xff]  }
 0x106   : > { %1412 = vmatpush1.bf16.msra.mxu0 %v3975_v8  ;;  %1084 = vmatprep.mubr.bf16.mxu0 %v4597_v0  ;;  %v4067_v8 = vld [vmem:[%s4914_s23 + $0x190] ss:$8 sps:$4 sm:$0xff]  }
 0x107   : > { %1267 = vmatmul.mubr.bf16.vlgmr.msra.gmra.mxu1 %v3981_v9  ;;  %1413 = vmatprep.subr.bf16.mxu0 %v3984_v10  ;;  %v4075_v9 = vld [vmem:[%s4914_s23 + $0x184] ss:$8 sps:$4 sm:$0xff]   ;;  %v4070_v10 = vld [vmem:[%s4908_s18 + $0x180] ss:$8 sps:$4 sm:$0xff]   ;;  %s1662_s18 = scalar_lea.vmem [#allocation3], %s3706_s27 }
 0x108   : > { %1604 = vmatpush1.bf16.msra.mxu1 %v3978_v11  ;;  %1635 = vmatprep.mubr.bf16.mxu1 %v4597_v0  ;;  %v4073_v11 = vld [vmem:[%s4914_s23 + $0x180] ss:$8 sps:$4 sm:$0xff]   ;;  %s3708_s23 = sadd.s32 96, %s5061_s19 }
 0x109   : > { %1605 = vmatprep.subr.bf16.mxu1 %v3987_v12  ;;  %v4076_v12 = vld [vmem:[#allocation4] sm:$0xff]  }
 0x10a   : > { %1414 = vmatpush1.bf16.msra.mxu0 %v3982_v13  ;;  %v4077_v13 = vld [vmem:[#allocation7] sm:$0xff]  }
 0x10b   : > { %1415 = vmatprep.subr.bf16.mxu0 %v3990_v14  ;;  %v4078_v14 = vld [vmem:[#allocation4 + $0x8] sm:$0xff]  }
 0x10c   : > { %1606 = vmatpush1.bf16.msra.mxu1 %v3985_v15 }
 0x10d   : > { %1607 = vmatprep.subr.bf16.mxu1 %v3993_v16  ;;  %1085 = vmatmul.mubr.bf16.gmra.mxu0 %v4006_v17 }
 0x10e   : > { %1416 = vmatpush1.bf16.msra.mxu0 %v3988_v18  ;;  %1443 = vmatprep.mubr.bf16.mxu0 %v4597_v0 }
 0x10f   : > { %1417 = vmatprep.subr.bf16.mxu0 %v3996_v19 }
 0x110   : > { %1608 = vmatpush1.bf16.msra.mxu1 %v3991_v20 }
 0x111   : > { %1609 = vmatprep.subr.bf16.mxu1 %v3999_v21 }
 0x112   : > { %1418 = vmatpush1.bf16.msra.mxu0 %v3994_v22 }
 0x113   : > { %1419 = vmatprep.subr.bf16.mxu0 %v4002_v23 }
 0x114   : > { %1610 = vmatpush1.bf16.msra.mxu1 %v3997_v24 }
 0x115   : > { %1611 = vmatprep.subr.bf16.mxu1 %v4005_v25 }
 0x116   : > { %1420 = vmatpush1.bf16.msra.mxu0 %v4000_v26 }
 0x117   : > { %1421 = vmatprep.subr.bf16.mxu0 %v4009_v27 }
 0x118   : > { %1612 = vmatpush1.bf16.msra.mxu1 %v4003_v28 }
 0x119   : > { %1613 = vmatprep.subr.bf16.mxu1 %v4012_v29 }
 0x11a   : > { %1422 = vmatpush1.bf16.msra.mxu0 %v4007_v30 }
 0x11b   : > { %1423 = vmatprep.subr.bf16.mxu0 %v4015_v31 }
 0x11c   : > { %1614 = vmatpush1.bf16.msra.mxu1 %v4010_v32 }
 0x11d   : > { %1615 = vmatprep.subr.bf16.mxu1 %v4018_v33 }
 0x11e   : > { %1424 = vmatpush1.bf16.msra.mxu0 %v4013_v34 }
 0x11f   : > { %1425 = vmatprep.subr.bf16.mxu0 %v4021_v35 }
 0x120   : > { %1616 = vmatpush1.bf16.msra.mxu1 %v4016_v36 }
 0x121   : > { %1617 = vmatprep.subr.bf16.mxu1 %v4024_v37 }
 0x122   : > { %1426 = vmatpush1.bf16.msra.mxu0 %v4019_v38 }
 0x123   : > { %1780 = vmatprep.subr.bf16.mxu0 %v4028_v41 }
 0x124   : > { %1618 = vmatpush1.bf16.msra.mxu1 %v4022_v39 }
 0x125   : > { %1444 = vmatmul.mubr.bf16.vlgmr.msra.gmra.mxu0 %v4025_v40  ;;  %1972 = vmatprep.subr.bf16.mxu1 %v4031_v43 }
 0x126   : > { %1781 = vmatpush1.bf16.msra.mxu0 %v4026_v42  ;;  %1453 = vmatprep.mubr.bf16.mxu0 %v4597_v0 }
 0x127   : > { %1636 = vmatmul.mubr.bf16.vlgmr.msra.gmra.mxu1 %v4032_v44  ;;  %1782 = vmatprep.subr.bf16.mxu0 %v4035_v45 }
 0x128   : > { %1973 = vmatpush1.bf16.msra.mxu1 %v4029_v46  ;;  %2004 = vmatprep.mubr.bf16.mxu1 %v4597_v0 }
 0x129   : > { %1974 = vmatprep.subr.bf16.mxu1 %v4038_v47 }
 0x12a   : > { %1783 = vmatpush1.bf16.msra.mxu0 %v4033_v48 }
 0x12b   : > { %1784 = vmatprep.subr.bf16.mxu0 %v4041_v49 }
 0x12c   : > { %1975 = vmatpush1.bf16.msra.mxu1 %v4036_v50 }
 0x12d   : > { %1976 = vmatprep.subr.bf16.mxu1 %v4044_v51  ;;  %1454 = vmatmul.mubr.bf16.gmra.mxu0 %v4054_v52 }
 0x12e   : > { %1785 = vmatpush1.bf16.msra.mxu0 %v4039_v53  ;;  %1812 = vmatprep.mubr.bf16.mxu0 %v4597_v0 }
 0x12f   : > { %1786 = vmatprep.subr.bf16.mxu0 %v4047_v54 }
 0x130   : > { %1977 = vmatpush1.bf16.msra.mxu1 %v4042_v55 }
 0x131   : > { %1978 = vmatprep.subr.bf16.mxu1 %v4050_v56 }
 0x132   : > { %1787 = vmatpush1.bf16.msra.mxu0 %v4045_v57 }
 0x133   : > { %1788 = vmatprep.subr.bf16.mxu0 %v4053_v58 }
 0x134   : > { %1979 = vmatpush1.bf16.msra.mxu1 %v4048_v59 }
 0x135   : > { %1980 = vmatprep.subr.bf16.mxu1 %v4057_v60 }
 0x136   : > { %1789 = vmatpush1.bf16.msra.mxu0 %v4051_v61 }
 0x137   : > { %1790 = vmatprep.subr.bf16.mxu0 %v4060_v62 }
 0x138   : > { %1981 = vmatpush1.bf16.msra.mxu1 %v4055_v63 }
 0x139   : > { %1982 = vmatprep.subr.bf16.mxu1 %v4063_v1 }
 0x13a   : > { %1791 = vmatpush1.bf16.msra.mxu0 %v4058_v2 }
 0x13b   : > { %1792 = vmatprep.subr.bf16.mxu0 %v4066_v3 }
 0x13c   : > { %1983 = vmatpush1.bf16.msra.mxu1 %v4061_v4 }
 0x13d   : > { %1984 = vmatprep.subr.bf16.mxu1 %v4069_v5 }
 0x13e   : > { %1793 = vmatpush1.bf16.msra.mxu0 %v4064_v6 }
 0x13f   : > { %1794 = vmatprep.subr.bf16.mxu0 %v4072_v7 }
 0x140   : > { %1985 = vmatpush1.bf16.msra.mxu1 %v4067_v8 }
 0x141   : > { %1986 = vmatprep.subr.bf16.mxu1 %v4075_v9 }
 0x142   : > { %1795 = vmatpush1.bf16.msra.mxu0 %v4070_v10 }
 0x144   : > { %1987 = vmatpush1.bf16.msra.mxu1 %v4073_v11 }
 0x145   : > { %1813 = vmatmul.mubr.bf16.vlgmr.msra.gmra.mxu0 %v4076_v12 }
 0x146   : > { %1822 = vmatprep.mubr.bf16.mxu0 %v4597_v0 }
 0x147   : > { %2005 = vmatmul.mubr.bf16.vlgmr.msra.gmra.mxu1 %v4077_v13 }
 0x14d   : > { %1823 = vmatmul.mubr.bf16.gmra.mxu0 %v4078_v14 }
 0x1a5   : > { %v707_v15 = vpop.f32.mrf.mxu0  ;;  %v898_v17 = vpop.f32.mrf.mxu1 }
 0x1a7   : > { %v709_v16 = vpop.f32.mrf.mxu0  ;;  %v900_v20 = vpop.f32.mrf.mxu1 }
 0x1a8   : > { %v3675_v18 = vpack.c.bf16 %v709_v16, %v707_v15  ;;  %v3680_v21 = vpack.c.bf16 %v900_v20, %v898_v17 }
 0x1a9   : > { %v711_v19 = vpop.f32.mrf.mxu0  ;;  %v902_v0 = vpop.f32.mrf.mxu1 }
 0x1aa   : > { %755 = vst [vmem:[%s754_s15] sm:$0xff] %v3675_v18  ;;  %924 = vst [vmem:[%s923_s1] sm:$0xff] %v3680_v21 }
 0x1ab   : > { %v713_v22 = vpop.f32.mrf.mxu0  ;;  %v904_v24 = vpop.f32.mrf.mxu1 }
 0x1ac   : > { %v3676_v23 = vpack.c.bf16 %v713_v22, %v711_v19  ;;  %v3681_v26 = vpack.c.bf16 %v904_v24, %v902_v0 }
 0x1ad   : > { %v717_v25 = vpop.f32.mrf.mxu0 }
 0x1ae   : > { %756 = vst [vmem:[%s754_s15 + $0x8] sm:$0xff] %v3676_v23  ;;  %925 = vst [vmem:[%s923_s1 + $0x8] sm:$0xff] %v3681_v26  ;;  %s1857_s1 = sshra.s32 %s3708_s23, 3 }
 0x1af   : > { %v719_v27 = vpop.f32.mrf.mxu0  ;;  %s3713_s16 = sshll.u32 %s1857_s1, 3 }
 0x1b0   : > { %v3677_v28 = vpack.c.bf16 %v719_v27, %v717_v25  ;;  %s1861_s12 = scalar_lea.vmem [#allocation2], %s3713_s16 }
 0x1b1   : > { %v721_v29 = vpop.f32.mrf.mxu0 }
 0x1b2   : > { %757 = vst [vmem:[%s754_s15 + $0x10] sm:$0xff] %v3677_v28 }
 0x1b3   : > { %v723_v30 = vpop.f32.mrf.mxu0 }
 0x1b4   : > { %v3678_v31 = vpack.c.bf16 %v723_v30, %v721_v29 }
 0x1b6   : > { %758 = vst [vmem:[%s754_s15 + $0x18] sm:$0xff] %v3678_v31  ;;  %s3715_s15 = sadd.s32 48, %s5064_s17 }
 0x1b7   : > { %s2027_s24 = sshra.s32 %s3715_s15, 3 }
 0x1b8   : > { %s3718_s30 = sshll.u32 %s2027_s24, 3 }
 0x1b9   : > { %s2031_s13 = scalar_lea.vmem [#allocation3], %s3718_s30 }
 0x1c5   : > { %v1076_v32 = vpop.f32.mrf.mxu0 }
 0x1c7   : > { %v1078_v33 = vpop.f32.mrf.mxu0  ;;  %v1268_v34 = vpop.f32.mrf.mxu1 }
 0x1c8   : > { %v3685_v35 = vpack.c.bf16 %v1078_v33, %v1076_v32 }
 0x1c9   : > { %v1080_v36 = vpop.f32.mrf.mxu0  ;;  %v1270_v37 = vpop.f32.mrf.mxu1 }
 0x1ca   : > { %1124 = vst [vmem:[%s1123_s29] sm:$0xff] %v3685_v35  ;;  %v3692_v38 = vpack.c.bf16 %v1270_v37, %v1268_v34 }
 0x1cb   : > { %v1082_v39 = vpop.f32.mrf.mxu0  ;;  %v1272_v40 = vpop.f32.mrf.mxu1 }
 0x1cc   : > { %1294 = vst [vmem:[%s1293_s21] sm:$0xff] %v3692_v38  ;;  %v3686_v41 = vpack.c.bf16 %v1082_v39, %v1080_v36 }
 0x1cd   : > { %v1274_v42 = vpop.f32.mrf.mxu1  ;;  %v1086_v43 = vpop.f32.mrf.mxu0 }
 0x1ce   : > { %1125 = vst [vmem:[%s1123_s29 + $0x8] sm:$0xff] %v3686_v41  ;;  %v3693_v44 = vpack.c.bf16 %v1274_v42, %v1272_v40 }
 0x1cf   : > { %v1088_v45 = vpop.f32.mrf.mxu0 }
 0x1d0   : > { %1295 = vst [vmem:[%s1293_s21 + $0x8] sm:$0xff] %v3693_v44  ;;  %v3687_v46 = vpack.c.bf16 %v1088_v45, %v1086_v43 }
 0x1d1   : > { %v1090_v47 = vpop.f32.mrf.mxu0 }
 0x1d2   : > { %1126 = vst [vmem:[%s1123_s29 + $0x10] sm:$0xff] %v3687_v46 }
 0x1d3   : > { %v1092_v48 = vpop.f32.mrf.mxu0 }
 0x1d4   : > { %v3688_v49 = vpack.c.bf16 %v1092_v48, %v1090_v47 }
 0x1d6   : > { %1127 = vst [vmem:[%s1123_s29 + $0x18] sm:$0xff] %v3688_v49 }
 0x1e5   : > { %v1445_v50 = vpop.f32.mrf.mxu0 }
 0x1e7   : > { %v1447_v51 = vpop.f32.mrf.mxu0  ;;  %v1637_v52 = vpop.f32.mrf.mxu1 }
 0x1e8   : > { %v3697_v53 = vpack.c.bf16 %v1447_v51, %v1445_v50 }
 0x1e9   : > { %v1449_v54 = vpop.f32.mrf.mxu0  ;;  %v1639_v55 = vpop.f32.mrf.mxu1 }
 0x1ea   : > { %1493 = vst [vmem:[%s1492_s7] sm:$0xff] %v3697_v53  ;;  %v3704_v56 = vpack.c.bf16 %v1639_v55, %v1637_v52 }
 0x1eb   : > { %v1451_v57 = vpop.f32.mrf.mxu0  ;;  %v1641_v58 = vpop.f32.mrf.mxu1 }
 0x1ec   : > { %1663 = vst [vmem:[%s1662_s18] sm:$0xff] %v3704_v56  ;;  %v3698_v59 = vpack.c.bf16 %v1451_v57, %v1449_v54 }
 0x1ed   : > { %v1643_v60 = vpop.f32.mrf.mxu1  ;;  %v1455_v61 = vpop.f32.mrf.mxu0 }
 0x1ee   : > { %1494 = vst [vmem:[%s1492_s7 + $0x8] sm:$0xff] %v3698_v59  ;;  %v3705_v62 = vpack.c.bf16 %v1643_v60, %v1641_v58 }
 0x1ef   : > { %v1457_v63 = vpop.f32.mrf.mxu0 }
 0x1f0   : > { %1664 = vst [vmem:[%s1662_s18 + $0x8] sm:$0xff] %v3705_v62  ;;  %v3699_v1 = vpack.c.bf16 %v1457_v63, %v1455_v61 }
 0x1f1   : > { %v1459_v2 = vpop.f32.mrf.mxu0 }
 0x1f2   : > { %1495 = vst [vmem:[%s1492_s7 + $0x10] sm:$0xff] %v3699_v1 }
 0x1f3   : > { %v1461_v3 = vpop.f32.mrf.mxu0 }
 0x1f4   : > { %v3700_v4 = vpack.c.bf16 %v1461_v3, %v1459_v2 }
 0x1f6   : > { %1496 = vst [vmem:[%s1492_s7 + $0x18] sm:$0xff] %v3700_v4 }
 0x205   : > { %v1814_v5 = vpop.f32.mrf.mxu0 }
 0x207   : > { %v1816_v6 = vpop.f32.mrf.mxu0  ;;  %v2006_v7 = vpop.f32.mrf.mxu1 }
 0x208   : > { %v3709_v8 = vpack.c.bf16 %v1816_v6, %v1814_v5 }
 0x209   : > { %v1818_v9 = vpop.f32.mrf.mxu0  ;;  %v2008_v10 = vpop.f32.mrf.mxu1 }
 0x20a   : > { %1862 = vst [vmem:[%s1861_s12] sm:$0xff] %v3709_v8  ;;  %v3716_v11 = vpack.c.bf16 %v2008_v10, %v2006_v7 }
 0x20b   : > { %v1820_v12 = vpop.f32.mrf.mxu0  ;;  %v2010_v13 = vpop.f32.mrf.mxu1 }
 0x20c   : > { %2032 = vst [vmem:[%s2031_s13] sm:$0xff] %v3716_v11  ;;  %v3710_v14 = vpack.c.bf16 %v1820_v12, %v1818_v9 }
 0x20d   : > { %v1824_v15 = vpop.f32.mrf.mxu0  ;;  %v2012_v16 = vpop.f32.mrf.mxu1 }
 0x20e   : > { %1863 = vst [vmem:[%s1861_s12 + $0x8] sm:$0xff] %v3710_v14  ;;  %v3717_v17 = vpack.c.bf16 %v2012_v16, %v2010_v13 }
 0x20f   : > { %v1826_v18 = vpop.f32.mrf.mxu0 }
 0x210   : > { %2033 = vst [vmem:[%s2031_s13 + $0x8] sm:$0xff] %v3717_v17  ;;  %v3711_v19 = vpack.c.bf16 %v1826_v18, %v1824_v15 }
 0x211   : > { %v1828_v20 = vpop.f32.mrf.mxu0 }
 0x212   : > { %1864 = vst [vmem:[%s1861_s12 + $0x10] sm:$0xff] %v3711_v19  ;;  %2037 = sbr.rel (%p3562_p12) target bundleno = 1091 (0x443), region = 100 }
 0x213   : > { %v1830_v21 = vpop.f32.mrf.mxu0 }
 0x214   : > { %v3712_v22 = vpack.c.bf16 %v1830_v21, %v1828_v20 }
 0x216   : > { %1865 = vst [vmem:[%s1861_s12 + $0x18] sm:$0xff] %v3712_v22 }
 0x217   : > { %v4598_v24 = vmov 0   ;;  %v4100_v30 = vld [vmem:[#allocation16 + $0x74] ss:$8 sps:$4 sm:$0xff]   ;;  %v4102_v31 = vld [vmem:[#allocation16 + $0x70] ss:$8 sps:$4 sm:$0xff]   ;;  %v4155_v10 = vld [vmem:[#allocation4 + $0x8] sm:$0xff]  }
 0x218   : > { %2225 = vmatprep.mubr.bf16.mxu0 %v4598_v24  ;;  %2193 = vmatprep.subr.bf16.mxu0 %v4100_v30  ;;  %v4106_v34 = vld [vmem:[#allocation16 + $0x64] ss:$8 sps:$4 sm:$0xff]   ;;  %v4108_v35 = vld [vmem:[#allocation16 + $0x60] ss:$8 sps:$4 sm:$0xff]   ;;  %v4112_v37 = vld [vmem:[#allocation16 + $0x54] ss:$8 sps:$4 sm:$0xff]  }
 0x219   : > { %2194 = vmatpush1.bf16.msra.mxu0 %v4102_v31  ;;  %v4114_v39 = vld [vmem:[#allocation16 + $0x50] ss:$8 sps:$4 sm:$0xff]   ;;  %v4118_v40 = vld [vmem:[#allocation16 + $0x44] ss:$8 sps:$4 sm:$0xff]   ;;  %v4120_v43 = vld [vmem:[#allocation16 + $0x40] ss:$8 sps:$4 sm:$0xff]  }
 0x21a   : > { %2195 = vmatprep.subr.bf16.mxu0 %v4106_v34  ;;  %v4124_v44 = vld [vmem:[#allocation16 + $0x34] ss:$8 sps:$4 sm:$0xff]   ;;  %v4126_v47 = vld [vmem:[#allocation16 + $0x30] ss:$8 sps:$4 sm:$0xff]   ;;  %v4130_v48 = vld [vmem:[#allocation16 + $0x24] ss:$8 sps:$4 sm:$0xff]  }
 0x21b   : > { %v4132_v51 = vld [vmem:[#allocation16 + $0x20] ss:$8 sps:$4 sm:$0xff]   ;;  %v4136_v52 = vld [vmem:[#allocation16 + $0x14] ss:$8 sps:$4 sm:$0xff]   ;;  %v4138_v55 = vld [vmem:[#allocation16 + $0x10] ss:$8 sps:$4 sm:$0xff]  }
 0x21c   : > { %v4142_v56 = vld [vmem:[#allocation16 + $0x4] ss:$8 sps:$4 sm:$0xff]   ;;  %v4154_v57 = vld [vmem:[#allocation9 + $0x4] ss:$8 sps:$4 sm:$0xff]   ;;  %v4144_v60 = vld [vmem:[#allocation16] ss:$8 sps:$4 sm:$0xff]  }
 0x21d   : > { %v4079_v0 = vld [vmem:[#allocation2 + $0x74] ss:$8 sps:$4 sm:$0xff]   ;;  %v4081_v23 = vld [vmem:[#allocation2 + $0x70] ss:$8 sps:$4 sm:$0xff]   ;;  %v4082_v25 = vld [vmem:[#allocation2 + $0x64] ss:$8 sps:$4 sm:$0xff]   ;;  %2196 = vmatpush1.bf16.msra.mxu0 %v4108_v35  ;;  %2458 = vmatprep.mubr.bf16.mxu1 %v4154_v57 }
 0x21e   : > { %2426 = vmatprep.subr.bf16.mxu1 %v4079_v0  ;;  %v4084_v26 = vld [vmem:[#allocation2 + $0x60] ss:$8 sps:$4 sm:$0xff]   ;;  %v4085_v27 = vld [vmem:[#allocation2 + $0x54] ss:$8 sps:$4 sm:$0xff]   ;;  %v4087_v28 = vld [vmem:[#allocation2 + $0x50] ss:$8 sps:$4 sm:$0xff]   ;;  %2197 = vmatprep.subr.bf16.mxu0 %v4112_v37 }
 0x21f   : > { %2427 = vmatpush1.bf16.msra.mxu1 %v4081_v23  ;;  %v4088_v29 = vld [vmem:[#allocation2 + $0x44] ss:$8 sps:$4 sm:$0xff]   ;;  %v4090_v32 = vld [vmem:[#allocation2 + $0x40] ss:$8 sps:$4 sm:$0xff]   ;;  %v4091_v33 = vld [vmem:[#allocation2 + $0x34] ss:$8 sps:$4 sm:$0xff]  }
 0x220   : > { %2428 = vmatprep.subr.bf16.mxu1 %v4082_v25  ;;  %v4093_v36 = vld [vmem:[#allocation2 + $0x30] ss:$8 sps:$4 sm:$0xff]   ;;  %v4094_v38 = vld [vmem:[#allocation2 + $0x24] ss:$8 sps:$4 sm:$0xff]   ;;  %v4096_v41 = vld [vmem:[#allocation2 + $0x20] ss:$8 sps:$4 sm:$0xff]  }
 0x221   : > { %v4097_v42 = vld [vmem:[#allocation2 + $0x14] ss:$8 sps:$4 sm:$0xff]   ;;  %2198 = vmatpush1.bf16.msra.mxu0 %v4114_v39  ;;  %v4099_v45 = vld [vmem:[#allocation2 + $0x10] ss:$8 sps:$4 sm:$0xff]   ;;  %v4103_v46 = vld [vmem:[#allocation2 + $0x4] ss:$8 sps:$4 sm:$0xff]  }
 0x222   : > { %2199 = vmatprep.subr.bf16.mxu0 %v4118_v40  ;;  %v4105_v49 = vld [vmem:[#allocation2] ss:$8 sps:$4 sm:$0xff]   ;;  %v4109_v50 = vld [vmem:[#allocation2 + $0xf4] ss:$8 sps:$4 sm:$0xff]   ;;  %v4111_v53 = vld [vmem:[#allocation2 + $0xf0] ss:$8 sps:$4 sm:$0xff]  }
 0x223   : > { %2429 = vmatpush1.bf16.msra.mxu1 %v4084_v26  ;;  %v4115_v54 = vld [vmem:[#allocation2 + $0xe4] ss:$8 sps:$4 sm:$0xff]   ;;  %v4117_v58 = vld [vmem:[#allocation2 + $0xe0] ss:$8 sps:$4 sm:$0xff]   ;;  %v4121_v59 = vld [vmem:[#allocation2 + $0xd4] ss:$8 sps:$4 sm:$0xff]  }
 0x224   : > { %2430 = vmatprep.subr.bf16.mxu1 %v4085_v27  ;;  %v4161_v61 = vld [vmem:[#allocation18 + $0x74] ss:$8 sps:$4 sm:$0xff]   ;;  %v4123_v62 = vld [vmem:[#allocation2 + $0xd0] ss:$8 sps:$4 sm:$0xff]   ;;  %v4164_v3 = vld [vmem:[#allocation18 + $0x64] ss:$8 sps:$4 sm:$0xff]  }
 0x225   : > { %2200 = vmatpush1.bf16.msra.mxu0 %v4120_v43  ;;  %v4127_v63 = vld [vmem:[#allocation2 + $0xc4] ss:$8 sps:$4 sm:$0xff]   ;;  %v4159_v2 = vld [vmem:[#allocation18 + $0x70] ss:$8 sps:$4 sm:$0xff]   ;;  %v4133_v5 = vld [vmem:[#allocation2 + $0xb4] ss:$8 sps:$4 sm:$0xff]  }
 0x226   : > { %2201 = vmatprep.subr.bf16.mxu0 %v4124_v44  ;;  %v4148_v1 = vld [vmem:[#allocation4] sm:$0xff]   ;;  %v4162_v6 = vld [vmem:[#allocation18 + $0x60] ss:$8 sps:$4 sm:$0xff]   ;;  %v4170_v12 = vld [vmem:[#allocation18 + $0x44] ss:$8 sps:$4 sm:$0xff]   ;;  %vm2835_vm0 = vcmask 261120  }
 0x227   : > { %2431 = vmatpush1.bf16.msra.mxu1 %v4087_v28  ;;  %v4129_v4 = vld [vmem:[#allocation2 + $0xc0] ss:$8 sps:$4 sm:$0xff]   ;;  %v4167_v7 = vld [vmem:[#allocation18 + $0x54] ss:$8 sps:$4 sm:$0xff]   ;;  %v4135_v8 = vld [vmem:[#allocation2 + $0xb0] ss:$8 sps:$4 sm:$0xff]  }
 0x228   : > { %2432 = vmatprep.subr.bf16.mxu1 %v4088_v29  ;;  %v4139_v9 = vld [vmem:[#allocation2 + $0xa4] ss:$8 sps:$4 sm:$0xff]   ;;  %v4165_v11 = vld [vmem:[#allocation18 + $0x50] ss:$8 sps:$4 sm:$0xff]   ;;  %v4145_v14 = vld [vmem:[#allocation2 + $0x94] ss:$8 sps:$4 sm:$0xff]  }
 0x229   : > { %2202 = vmatpush1.bf16.msra.mxu0 %v4126_v47  ;;  %v4141_v13 = vld [vmem:[#allocation2 + $0xa0] ss:$8 sps:$4 sm:$0xff]   ;;  %v4173_v16 = vld [vmem:[#allocation18 + $0x34] ss:$8 sps:$4 sm:$0xff]   ;;  %v4147_v17 = vld [vmem:[#allocation2 + $0x90] ss:$8 sps:$4 sm:$0xff]  }
 0x22a   : > { %2203 = vmatprep.subr.bf16.mxu0 %v4130_v48  ;;  %v4168_v15 = vld [vmem:[#allocation18 + $0x40] ss:$8 sps:$4 sm:$0xff]   ;;  %v4149_v18 = vld [vmem:[#allocation2 + $0x84] ss:$8 sps:$4 sm:$0xff]   ;;  %v4171_v19 = vld [vmem:[#allocation18 + $0x30] ss:$8 sps:$4 sm:$0xff]   ;;  %v2480_v48 = vlaneseq }
 0x22b   : > { %2433 = vmatpush1.bf16.msra.mxu1 %v4090_v32  ;;  %v4176_v20 = vld [vmem:[#allocation18 + $0x24] ss:$8 sps:$4 sm:$0xff]   ;;  %v4151_v21 = vld [vmem:[#allocation2 + $0x80] ss:$8 sps:$4 sm:$0xff]   ;;  %v4179_v23 = vld [vmem:[#allocation18 + $0x14] ss:$8 sps:$4 sm:$0xff]  }
 0x22c   : > { %2434 = vmatprep.subr.bf16.mxu1 %v4091_v33  ;;  %v4174_v22 = vld [vmem:[#allocation18 + $0x20] ss:$8 sps:$4 sm:$0xff]   ;;  %v4152_v0 = vld [vmem:[#allocation9] ss:$8 sps:$4 sm:$0xff]   ;;  %v4156_v25 = vld [vmem:[#allocation9 + $0x14] ss:$8 sps:$4 sm:$0xff]  }
 0x22d   : > { %2204 = vmatpush1.bf16.msra.mxu0 %v4132_v51  ;;  %v4177_v26 = vld [vmem:[#allocation18 + $0x10] ss:$8 sps:$4 sm:$0xff]   ;;  %v4182_v27 = vld [vmem:[#allocation18 + $0x4] ss:$8 sps:$4 sm:$0xff]   ;;  %v4180_v28 = vld [vmem:[#allocation18] ss:$8 sps:$4 sm:$0xff]  }
 0x22e   : > { %2205 = vmatprep.subr.bf16.mxu0 %v4136_v52  ;;  %v4158_v29 = vld [vmem:[#allocation9 + $0x10] ss:$8 sps:$4 sm:$0xff]   ;;  %v4185_v30 = vld [vmem:[#allocation3 + $0x74] ss:$8 sps:$4 sm:$0xff]   ;;  %v4189_v33 = vld [vmem:[#allocation3 + $0x64] ss:$8 sps:$4 sm:$0xff]  }
 0x22f   : > { %2435 = vmatpush1.bf16.msra.mxu1 %v4093_v36  ;;  %v4186_v31 = vld [vmem:[#allocation7] sm:$0xff]   ;;  %v4187_v34 = vld [vmem:[#allocation3 + $0x60] ss:$8 sps:$4 sm:$0xff]   ;;  %v4195_v37 = vld [vmem:[#allocation3 + $0x44] ss:$8 sps:$4 sm:$0xff]   ;;  %vm3025_vm1 = vcmask 1040384  }
 0x230   : > { %2436 = vmatprep.subr.bf16.mxu1 %v4094_v38  ;;  %v4183_v32 = vld [vmem:[#allocation3 + $0x70] ss:$8 sps:$4 sm:$0xff]   ;;  %v4192_v35 = vld [vmem:[#allocation3 + $0x54] ss:$8 sps:$4 sm:$0xff]   ;;  %v4193_v38 = vld [vmem:[#allocation3 + $0x40] ss:$8 sps:$4 sm:$0xff]  }
 0x231   : > { %2206 = vmatpush1.bf16.msra.mxu0 %v4138_v55  ;;  %v4190_v36 = vld [vmem:[#allocation3 + $0x50] ss:$8 sps:$4 sm:$0xff]   ;;  %v4198_v39 = vld [vmem:[#allocation3 + $0x34] ss:$8 sps:$4 sm:$0xff]   ;;  %v4205_v44 = vld [vmem:[#allocation3] ss:$8 sps:$4 sm:$0xff]  }
 0x232   : > { %2207 = vmatprep.subr.bf16.mxu0 %v4142_v56  ;;  %v4196_v40 = vld [vmem:[#allocation3 + $0x30] ss:$8 sps:$4 sm:$0xff]   ;;  %v4204_v43 = vld [vmem:[#allocation3 + $0x14] ss:$8 sps:$4 sm:$0xff]  }
 0x233   : > { %2437 = vmatpush1.bf16.msra.mxu1 %v4096_v41  ;;  %v4201_v41 = vld [vmem:[#allocation3 + $0x24] ss:$8 sps:$4 sm:$0xff]  }
 0x234   : > { %2438 = vmatprep.subr.bf16.mxu1 %v4097_v42  ;;  %v4199_v42 = vld [vmem:[#allocation3 + $0x20] ss:$8 sps:$4 sm:$0xff]  }
 0x235   : > { %2208 = vmatpush1.bf16.msra.mxu0 %v4144_v60 }
 0x236   : > { %2656 = vmatprep.subr.bf16.mxu0 %v4161_v61 }
 0x237   : > { %2439 = vmatpush1.bf16.msra.mxu1 %v4099_v45  ;;  %v4207_v45 = vld [vmem:[#allocation3 + $0x4] ss:$8 sps:$4 sm:$0xff]  }
 0x238   : > { %2440 = vmatprep.subr.bf16.mxu1 %v4103_v46  ;;  %2226 = vmatmul.mubr.bf16.vlgmr.msra.gmra.mxu0 %v4148_v1  ;;  %v4208_v46 = vld [vmem:[#allocation10] sm:$0xff]  }
 0x239   : > { %2235 = vmatprep.mubr.bf16.mxu0 %v4598_v24  ;;  %2657 = vmatpush1.bf16.msra.mxu0 %v4159_v2 }
 0x23a   : > { %2658 = vmatprep.subr.bf16.mxu0 %v4164_v3 }
 0x23b   : > { %2441 = vmatpush1.bf16.msra.mxu1 %v4105_v49 }
 0x23c   : > { %2442 = vmatprep.subr.bf16.mxu1 %v4109_v50  ;;  %v2481_v50 = vshrl.u32 %v2480_v48, 7 }
 0x23d   : > { %2659 = vmatpush1.bf16.msra.mxu0 %v4162_v6 }
 0x23e   : > { %2660 = vmatprep.subr.bf16.mxu0 %v4167_v7  ;;  %v5080_v52 = vsub.s32 0, %v2481_v50 }
 0x23f   : > { %2443 = vmatpush2.bf16.msra.mxu1 %v4111_v53  ;;  %v2038_v53 = vld [vmem:[%s5162_s9] ss:$8 sm:$0x3] }
 0x240   : > { %2444 = vmatprep.subr.bf16.mxu1 %v4115_v54  ;;  %2236 = vmatmul.mubr.bf16.gmra.mxu0 %v4155_v10  ;;  %v5085_v54 = vsub.s32 1, %v2481_v50  ;;  %v2483_v56 = vrot.slane %v2038_v53, %v5080_v52 }
 0x241   : > { %2661 = vmatpush1.bf16.msra.mxu0 %v4165_v11  ;;  %2688 = vmatprep.mubr.bf16.mxu0 %v4598_v24 }
 0x242   : > { %2662 = vmatprep.subr.bf16.mxu0 %v4170_v12 }
 0x243   : > { %2445 = vmatpush2.bf16.msra.mxu1 %v4117_v58 }
 0x244   : > { %2446 = vmatprep.subr.bf16.mxu1 %v4121_v59  ;;  %v2487_v59 = vrot.slane %v2038_v53, %v5085_v54 }
 0x245   : > { %2663 = vmatpush1.bf16.msra.mxu0 %v4168_v15 }
 0x246   : > { %2664 = vmatprep.subr.bf16.mxu0 %v4173_v16 }
 0x247   : > { %2447 = vmatpush2.bf16.msra.mxu1 %v4123_v62 }
 0x248   : > { %2448 = vmatprep.subr.bf16.mxu1 %v4127_v63 }
 0x249   : > { %2665 = vmatpush1.bf16.msra.mxu0 %v4171_v19 }
 0x24a   : > { %2666 = vmatprep.subr.bf16.mxu0 %v4176_v20 }
 0x24b   : > { %2449 = vmatpush2.bf16.msra.mxu1 %v4129_v4 }
 0x24c   : > { %2450 = vmatprep.subr.bf16.mxu1 %v4133_v5 }
 0x24d   : > { %2667 = vmatpush1.bf16.msra.mxu0 %v4174_v22 }
 0x24e   : > { %2668 = vmatprep.subr.bf16.mxu0 %v4179_v23 }
 0x24f   : > { %2451 = vmatpush2.bf16.msra.mxu1 %v4135_v8 }
 0x250   : > { %2452 = vmatprep.subr.bf16.mxu1 %v4139_v9 }
 0x251   : > { %2669 = vmatpush1.bf16.msra.mxu0 %v4177_v26 }
 0x252   : > { %2670 = vmatprep.subr.bf16.mxu0 %v4182_v27 }
 0x253   : > { %2453 = vmatpush2.bf16.msra.mxu1 %v4141_v13 }
 0x254   : > { %2454 = vmatprep.subr.bf16.mxu1 %v4145_v14 }
 0x255   : > { %2671 = vmatpush1.bf16.msra.mxu0 %v4180_v28 }
 0x256   : > { %2785 = vmatprep.subr.bf16.mxu0 %v4185_v30 }
 0x257   : > { %2455 = vmatpush2.bf16.msra.mxu1 %v4147_v17 }
 0x258   : > { %2456 = vmatprep.subr.bf16.mxu1 %v4149_v18  ;;  %2689 = vmatmul.mubr.bf16.vlgmr.msra.gmra.mxu0 %v4186_v31 }
 0x259   : > { %2786 = vmatpush1.bf16.msra.mxu0 %v4183_v32  ;;  %2817 = vmatprep.mubr.bf16.mxu0 %v4598_v24 }
 0x25a   : > { %2787 = vmatprep.subr.bf16.mxu0 %v4189_v33 }
 0x25b   : > { %2457 = vmatpush2.bf16.msra.mxu1 %v4151_v21 }
 0x25d   : > { %2788 = vmatpush1.bf16.msra.mxu0 %v4187_v34 }
 0x25e   : > { %2459 = vmatmul.mubr.bf16.vlgmr.msra.gmra.mxu1 %v4152_v0  ;;  %2789 = vmatprep.subr.bf16.mxu0 %v4192_v35 }
 0x25f   : > { %2468 = vmatprep.mubr.bf16.mxu1 %v4156_v25 }
 0x261   : > { %2790 = vmatpush1.bf16.msra.mxu0 %v4190_v36 }
 0x262   : > { %2791 = vmatprep.subr.bf16.mxu0 %v4195_v37 }
 0x265   : > { %2792 = vmatpush1.bf16.msra.mxu0 %v4193_v38 }
 0x266   : > { %2469 = vmatmul.mubr.bf16.gmra.mxu1 %v4158_v29  ;;  %2793 = vmatprep.subr.bf16.mxu0 %v4198_v39  ;;  %v4209_v39 = vld [vmem:[#allocation12] sm:$0xff]  }
 0x267   : > { %2871 = vmatprep.mubr.bf16.mxu1 %v4598_v24  ;;  %v4202_v24 = vld [vmem:[#allocation3 + $0x10] ss:$8 sps:$4 sm:$0xff]  }
 0x269   : > { %2794 = vmatpush1.bf16.msra.mxu0 %v4196_v40 }
 0x26a   : > { %2795 = vmatprep.subr.bf16.mxu0 %v4201_v41 }
 0x26d   : > { %2796 = vmatpush1.bf16.msra.mxu0 %v4199_v42 }
 0x26e   : > { %2797 = vmatprep.subr.bf16.mxu0 %v4204_v43 }
 0x271   : > { %2798 = vmatpush1.bf16.msra.mxu0 %v4202_v24 }
 0x272   : > { %2799 = vmatprep.subr.bf16.mxu0 %v4207_v45 }
 0x275   : > { %2800 = vmatpush1.bf16.msra.mxu0 %v4205_v44 }
 0x278   : > { %2818 = vmatmul.mubr.bf16.vlgmr.msra.gmra.mxu0 %v4208_v46  ;;  %v3563_v46 = vld [vmem:[%s5162_s9 + $0x1] ss:$8 sm:$0x3] }
 0x2f8   : > { %v2227_v47 = vpop.f32.mrf.mxu0 }
 0x2fa   : > { %v2229_v49 = vpop.f32.mrf.mxu0 }
 0x2fc   : > { %v2231_v51 = vpop.f32.mrf.mxu0 }
 0x2fe   : > { %v2233_v55 = vpop.f32.mrf.mxu0 }
 0x300   : > { %v2237_v60 = vpop.f32.mrf.mxu0 }
 0x302   : > { %v2239_v4 = vpop.f32.mrf.mxu0 }
 0x304   : > { %v2241_v14 = vpop.f32.mrf.mxu0 }
 0x306   : > { %v2243_v23 = vpop.f32.mrf.mxu0 }
 0x318   : > { %v2690_v40 = vpop.f32.mrf.mxu0 }
 0x31a   : > { %v2692_v41 = vpop.f32.mrf.mxu0 }
 0x31c   : > { %v2694_v42 = vpop.f32.mrf.mxu0 }
 0x31e   : > { %v2460_v57 = vpop.f32.mrf.mxu1  ;;  %v2696_v43 = vpop.f32.mrf.mxu0 }
 0x31f   : > { %v2461_v58 = vadd.f32 %v2460_v57, %v2227_v47 }
 0x320   : > { %v2462_v61 = vpop.f32.mrf.mxu1 }
 0x321   : > { %v2490_v62 = vadd.f32 %v2483_v56, %v2461_v58  ;;  %v2463_v63 = vadd.f32 %v2462_v61, %v2229_v49 }
 0x322   : > { %v2464_v1 = vpop.f32.mrf.mxu1 }
 0x323   : > { %v2491_v2 = vadd.f32 %v2487_v59, %v2463_v63  ;;  %v2465_v3 = vadd.f32 %v2464_v1, %v2231_v51  ;;  %v2498_v6 = vmax.f32 %v2490_v62, 0.0  ;;  %v2890_v51 = vrot.slane %v3563_v46, %v5080_v52 }
 0x324   : > { %v2466_v5 = vpop.f32.mrf.mxu1 }
 0x325   : > { %v2499_v7 = vmax.f32 %v2491_v2, 0.0  ;;  %v2492_v8 = vadd.f32 %v2483_v56, %v2465_v3  ;;  %v2467_v9 = vadd.f32 %v2466_v5, %v2233_v55 }
 0x326   : > { %v2470_v10 = vpop.f32.mrf.mxu1 }
 0x327   : > { %v3719_v11 = vpack.c.bf16 %v2499_v7, %v2498_v6  ;;  %v2493_v12 = vadd.f32 %v2487_v59, %v2467_v9  ;;  %v2471_v13 = vadd.f32 %v2470_v10, %v2237_v60  ;;  %v2500_v16 = vmax.f32 %v2492_v8, 0.0 }
 0x328   : > { %v2472_v15 = vpop.f32.mrf.mxu1 }
 0x329   : > { %2530 = vst [vmem:[#allocation19] sm:$0xff] %v3719_v11  ;;  %v2501_v17 = vmax.f32 %v2493_v12, 0.0  ;;  %v2494_v18 = vadd.f32 %v2483_v56, %v2471_v13  ;;  %v2473_v19 = vadd.f32 %v2472_v15, %v2239_v4  ;;  %v2506_v38 = vpack.c.bf16 %v2500_v16, %v2498_v6 }
 0x32a   : > { %v2474_v20 = vpop.f32.mrf.mxu1 }
 0x32b   : > { %v3720_v21 = vpack.c.bf16 %v2501_v17, %v2500_v16  ;;  %v2495_v22 = vadd.f32 %v2487_v59, %v2473_v19  ;;  %v2475_v0 = vadd.f32 %v2474_v20, %v2241_v14  ;;  %v2502_v26 = vmax.f32 %v2494_v18, 0.0 }
 0x32c   : > { %v2476_v25 = vpop.f32.mrf.mxu1  ;;  %v2507_v37 = vpack.c.bf16 %v2501_v17, %v2499_v7 }
 0x32d   : > { %2531 = vst [vmem:[#allocation19 + $0x8] sm:$0xff] %v3720_v21  ;;  %v2503_v27 = vmax.f32 %v2495_v22, 0.0  ;;  %v2496_v28 = vadd.f32 %v2483_v56, %v2475_v0  ;;  %v2477_v29 = vadd.f32 %v2476_v25, %v2243_v23  ;;  %v2894_v56 = vrot.slane %v3563_v46, %v5085_v54  ;;  %v3564_v46 = vld [vmem:[%s5162_s9 + $0x2] ss:$8 sm:$0x3] }
 0x32f   : > { %v3721_v30 = vpack.c.bf16 %v2503_v27, %v2502_v26  ;;  %v2497_v31 = vadd.f32 %v2487_v59, %v2477_v29  ;;  %v2504_v32 = vmax.f32 %v2496_v28, 0.0 }
 0x331   : > { %2532 = vst [vmem:[#allocation19 + $0x10] sm:$0xff] %v3721_v30  ;;  %v2505_v33 = vmax.f32 %v2497_v31, 0.0  ;;  %v2508_v36 = vpack.c.bf16 %v2504_v32, %v2502_v26 }
 0x333   : > { %v3722_v34 = vpack.c.bf16 %v2505_v33, %v2504_v32  ;;  %v2509_v35 = vpack.c.bf16 %v2505_v33, %v2503_v27 }
 0x335   : > { %2533 = vst [vmem:[#allocation19 + $0x18] sm:$0xff] %v3722_v34  ;;  %2851 = vmatprep.subr.bf16.mxu1 %v2509_v35 }
 0x336   : > { %2852 = vmatpush1.bf16.msra.mxu1 %v2508_v36 }
 0x337   : > { %2853 = vmatprep.subr.bf16.mxu1 %v2507_v37 }
 0x338   : > { %v2819_v24 = vpop.f32.mrf.mxu0 }
 0x339   : > { %v2820_v47 = vadd.f32 %v2819_v24, %v2690_v40 }
 0x33a   : > { %2854 = vmatpush1.bf16.msra.mxu1 %v2506_v38  ;;  %v2821_v44 = vpop.f32.mrf.mxu0 }
 0x33b   : > { %v2822_v49 = vadd.f32 %v2821_v44, %v2692_v41 }
 0x33c   : > { %v2823_v45 = vpop.f32.mrf.mxu0 }
 0x33d   : > { %3659 = vmatmul.mubr.msk.bf16.vlgmr.msra.gmra.mxu1 %vm2835_vm0, %v4209_v39  ;;  %v2824_v57 = vadd.f32 %v2823_v45, %v2694_v42 }
 0x33e   : > { %v2825_v53 = vpop.f32.mrf.mxu0 }
 0x33f   : > { %v2826_v60 = vadd.f32 %v2825_v53, %v2696_v43 }
 0x3fd   : > { %v2873_v48 = vpop.f32.mrf.mxu1 }
 0x3fe   : > { %v2882_v50 = vadd.f32 %v2873_v48, %v2820_v47 }
 0x3ff   : > { %v2875_v55 = vpop.f32.mrf.mxu1 }
 0x400   : > { %v2883_v58 = vadd.f32 %v2875_v55, %v2822_v49  ;;  %v2897_v61 = vadd.f32 %v2890_v51, %v2882_v50  ;;  %v2949_v49 = vrot.slane %v3564_v46, %v5080_v52  ;;  %v3565_v50 = vld [vmem:[%s5162_s9 + $0x3] ss:$8 sm:$0x3]  ;;  %v2953_v55 = vrot.slane %v3564_v46, %v5085_v54 }
 0x401   : > { %v2877_v59 = vpop.f32.mrf.mxu1 }
 0x402   : > { %v2884_v62 = vadd.f32 %v2877_v59, %v2824_v57  ;;  %v5094_v63 = vadd.f32 %v2894_v56, %v2883_v58  ;;  %v2917_v4 = vmul.f32 %v2897_v61, %v2897_v61  ;;  %v2972_v58 = vrot.slane %v3565_v50, %v5080_v52 }
 0x403   : > { %v2879_v1 = vpop.f32.mrf.mxu1 }
 0x404   : > { %v2899_v2 = vadd.f32 %v2890_v51, %v2884_v62  ;;  %v2885_v3 = vadd.f32 %v2879_v1, %v2826_v60  ;;  %v2918_v8 = vmul.f32 %v5094_v63, %v5094_v63 }
 0x406   : > { %v2901_v5 = vadd.f32 %v2899_v2, %v2897_v61  ;;  %v2919_v6 = vmul.f32 %v2899_v2, %v2899_v2  ;;  %v2900_v7 = vadd.f32 %v2894_v56, %v2885_v3 }
 0x408   : > { %v2902_v9 = vrot.slane %v2901_v5, 4  ;;  %v2921_v10 = vadd.f32 %v2919_v6, %v2917_v4  ;;  %v2908_v11 = vadd.f32 %v2900_v7, %v5094_v63  ;;  %v2920_v12 = vmul.f32 %v2900_v7, %v2900_v7 }
 0x40a   : > { %v2903_v13 = vadd.f32 %v2902_v9, %v2901_v5  ;;  %v2922_v14 = vrot.slane %v2921_v10, 4  ;;  %v2909_v15 = vrot.slane %v2908_v11, 4  ;;  %v2928_v16 = vadd.f32 %v2920_v12, %v2918_v8 }
 0x40c   : > { %v2904_v17 = vrot.slane %v2903_v13, 2  ;;  %v2923_v18 = vadd.f32 %v2922_v14, %v2921_v10  ;;  %v2910_v19 = vadd.f32 %v2909_v15, %v2908_v11  ;;  %v2929_v20 = vrot.slane %v2928_v16, 4 }
 0x40e   : > { %v2905_v21 = vadd.f32 %v2904_v17, %v2903_v13  ;;  %v2924_v22 = vrot.slane %v2923_v18, 2  ;;  %v2911_v0 = vrot.slane %v2910_v19, 2  ;;  %v2930_v23 = vadd.f32 %v2929_v20, %v2928_v16 }
 0x410   : > { %v2906_v25 = vrot.slane %v2905_v21, 1  ;;  %v2925_v26 = vadd.f32 %v2924_v22, %v2923_v18  ;;  %v2912_v27 = vadd.f32 %v2911_v0, %v2910_v19  ;;  %v2931_v28 = vrot.slane %v2930_v23, 2 }
 0x412   : > { %v2907_v29 = vadd.f32 %v2906_v25, %v2905_v21  ;;  %v2926_v30 = vrot.slane %v2925_v26, 1  ;;  %v2913_v31 = vrot.slane %v2912_v27, 1  ;;  %v2932_v32 = vadd.f32 %v2931_v28, %v2930_v23 }
 0x414   : > { %v2915_v33 = vmul.f32 0.0625, %v2907_v29  ;;  %v2927_v34 = vadd.f32 %v2926_v30, %v2925_v26  ;;  %v2914_v35 = vadd.f32 %v2913_v31, %v2912_v27  ;;  %v2933_v36 = vrot.slane %v2932_v32, 1 }
 0x416   : > { %v2935_v37 = vmul.f32 0.0625, %v2927_v34  ;;  %v2937_v38 = vmul.f32 %v2915_v33, %v2915_v33  ;;  %v2916_v39 = vmul.f32 0.0625, %v2914_v35  ;;  %v2934_v40 = vadd.f32 %v2933_v36, %v2932_v32 }
 0x417   : > { %v2941_v47 = vsub.f32 %v2897_v61, %v2915_v33  ;;  %v2943_v48 = vsub.f32 %v2899_v2, %v2915_v33  ;;  %v2976_v2 = vrot.slane %v3565_v50, %v5085_v54 }
 0x418   : > { %v2939_v41 = vsub.f32 %v2935_v37, %v2937_v38  ;;  %v2936_v42 = vmul.f32 0.0625, %v2934_v40  ;;  %v2938_v43 = vmul.f32 %v2916_v39, %v2916_v39  ;;  %v2942_v51 = vsub.f32 %v5094_v63, %v2916_v39 }
 0x419   : > { %v2944_v53 = vsub.f32 %v2900_v7, %v2916_v39  ;;  %v2956_v56 = vmul.f32 %v2949_v49, %v2941_v47  ;;  %v2958_v57 = vmul.f32 %v2949_v49, %v2943_v48 }
 0x41a   : > { %v2960_v24 = vadd.f32 1e-05, %v2939_v41  ;;  %v2940_v44 = vsub.f32 %v2936_v42, %v2938_v43  ;;  %v2957_v61 = vmul.f32 %v2953_v55, %v2942_v51 }
 0x41b   : > { %v2959_v1 = vmul.f32 %v2953_v55, %v2944_v53 }
 0x41c   : > { %4210 = vrsqrt.f32 %v2960_v24  ;;  %v2961_v45 = vadd.f32 1e-05, %v2940_v44 }
 0x41e   : > { %4212 = vrsqrt.f32 %v2961_v45 }
 0x429   : > { %v4211_v59 = vpop.eup %4210 }
 0x42a   : > { %v2964_v60 = vmul.f32 %v4211_v59, %v2956_v56  ;;  %v2966_v62 = vmul.f32 %v4211_v59, %v2958_v57 }
 0x42b   : > { %v4213_v3 = vpop.eup %4212 }
 0x42c   : > { %v2979_v4 = vadd.f32 %v2972_v58, %v2964_v60  ;;  %v2981_v5 = vadd.f32 %v2972_v58, %v2966_v62  ;;  %v2965_v6 = vmul.f32 %v4213_v3, %v2957_v61  ;;  %v2967_v8 = vmul.f32 %v4213_v3, %v2959_v1 }
 0x42e   : > { %v2983_v63 = vmax.f32 %v2979_v4, 0.0  ;;  %v2985_v7 = vmax.f32 %v2981_v5, 0.0  ;;  %v2980_v9 = vadd.f32 %v2976_v2, %v2965_v6  ;;  %v2982_v10 = vadd.f32 %v2976_v2, %v2967_v8 }
 0x430   : > { %v3001_v11 = vrot.slane %v2983_v63, 4  ;;  %v3013_v12 = vrot.slane %v2985_v7, 4  ;;  %v2984_v13 = vmax.f32 %v2980_v9, 0.0  ;;  %v2986_v52 = vmax.f32 %v2982_v10, 0.0 }
 0x432   : > { %v3002_v14 = vmax.f32 %v2983_v63, %v3001_v11  ;;  %v3014_v15 = vmax.f32 %v2985_v7, %v3013_v12  ;;  %v3723_v16 = vpack.c.bf16 %v2984_v13, %v2983_v63  ;;  %v3724_v17 = vpack.c.bf16 %v2986_v52, %v2985_v7 }
 0x433   : > { %v3007_v18 = vrot.slane %v2984_v13, 4  ;;  %v3019_v19 = vrot.slane %v2986_v52, 4 }
 0x434   : > { %v3003_v54 = vrot.slane %v3002_v14, 2  ;;  %v3015_v20 = vrot.slane %v3014_v15, 2  ;;  %2999 = vst [vmem:[#allocation20] sm:$0xff] %v3723_v16  ;;  %3000 = vst [vmem:[#allocation20 + $0x8] sm:$0xff] %v3724_v17 }
 0x435   : > { %v3008_v21 = vmax.f32 %v2984_v13, %v3007_v18  ;;  %v3020_v22 = vmax.f32 %v2986_v52, %v3019_v19 }
 0x436   : > { %v3004_v0 = vmax.f32 %v3002_v14, %v3003_v54  ;;  %v3016_v23 = vmax.f32 %v3014_v15, %v3015_v20 }
 0x437   : > { %v3009_v25 = vrot.slane %v3008_v21, 2  ;;  %v3021_v26 = vrot.slane %v3020_v22, 2 }
 0x438   : > { %v3005_v27 = vrot.slane %v3004_v0, 1  ;;  %v3017_v28 = vrot.slane %v3016_v23, 1 }
 0x439   : > { %v3010_v29 = vmax.f32 %v3008_v21, %v3009_v25  ;;  %v3022_v30 = vmax.f32 %v3020_v22, %v3021_v26 }
 0x43a   : > { %v3006_v31 = vmax.f32 %v3004_v0, %v3005_v27  ;;  %v3018_v32 = vmax.f32 %v3016_v23, %v3017_v28 }
 0x43b   : > { %v3011_v33 = vrot.slane %v3010_v29, 1  ;;  %v3023_v34 = vrot.slane %v3022_v30, 1 }
 0x43c   : > { %v3026_v37 = vsel %vm3025_vm1, %v3006_v31, %v3018_v32 }
 0x43d   : > { %v3012_v35 = vmax.f32 %v3010_v29, %v3011_v33  ;;  %v3024_v36 = vmax.f32 %v3022_v30, %v3023_v34 }
 0x43f   : > { %v3027_v38 = vsel %vm3025_vm1, %v3012_v35, %v3024_v36 }
 0x440   : > { %v3030_v39 = vcombine.low %v3026_v37, %v3027_v38 }
 0x442   : > { %3662 = vst.sshfl [vmem:[#allocation22] sm:$0x33 pattern:$0x76325410] %v3030_v39 }
 0x443 PF: > { %p3819_p4 = scmp.eq.s32.totalorder %s4690_s25, 1  ;;  %s4599_s3 = smov [#allocation20]  }
 0x444   : > { %s3059_s26 = sshll.u32 %s4599_s3, 4  ;;  %s4600_s27 = smov [#allocation19]   ;;  %s3060_s26 = int_to_ptr.vmem [resolvable:$true] %s3059_s26 }
 0x445   : > { %s3046_s7 = sshll.u32 %s4600_s27, 4  ;;  %s4452_s18 = scalar_lea.vmem %s3060_s26, 256  ;;  %s3047_s7 = int_to_ptr.vmem [resolvable:$true] %s3046_s7 }
 0x446   : > { %p4453_p6 = scmp.ne.s32.totalorder %s3060_s26, %s4452_s18  ;;  %p4459_p10 = scmp.lt.s32.totalorder %s3060_s26, %s3060_s26 }
 0x447   : > { %p4460_p1 = scmp.lt.s32.totalorder %s4452_s18, %s4452_s18 }
 0x448   : > { %p4454_p8 = pnand %p4453_p6, %p3819_p4 }
 0x449   : > { %p4461_p3 = por %p4460_p1, %p4459_p10 }
 0x44a   : > { %p4455_p7 = pneg %p4454_p8 }
 0x44c   : > { %p4462_p5 = pnand %p4461_p3, %p4455_p7 }
 0x44e   : > { %4465 = shalt.err (!%p4462_p5)
}
 0x44f   : > { %s4601_s23 = smov 128   ;;  %s4602_s15 = smov 8  }
 0x450   : > { %3766 = dma.vmem_to_hbm [thread:$0]  (%p3819_p4), %s3060_s26, 256, %s5164_s11, [#allocation21], %s4601_s23, %s4601_s23, %s4602_s15  }
 0x451   : > { %s4476_s16 = scalar_lea.vmem %s3047_s7, 512  ;;  %p4483_p9 = scmp.lt.s32.totalorder %s3047_s7, %s3047_s7 }
 0x452   : > { %p4477_p13 = scmp.ne.s32.totalorder %s3047_s7, %s4476_s16  ;;  %p4484_p11 = scmp.lt.s32.totalorder %s4476_s16, %s4476_s16 }
 0x454   : > { %p4478_p2 = pnand %p4477_p13, %p3819_p4  ;;  %p4485_p12 = por %p4484_p11, %p4483_p9 }
 0x456   : > { %p4479_p0 = pneg %p4478_p2 }
 0x458   : > { %p4486_p6 = pnand %p4485_p12, %p4479_p0 }
 0x45a   : > { %4489 = shalt.err (!%p4486_p6)
}
 0x45b   : > { %3764 = dma.vmem_to_hbm [thread:$0]  (%p3819_p4), %s3047_s7, 512, %s5163_s10, [#allocation6], %s4601_s23, %s4601_s23, %s4602_s15  }
 0x45c   : > { %s4603_s13 = smov [#allocation22]  }
 0x45d   : > { %s3073_s19 = sshll.u32 %s4603_s13, 4  ;;  %s3074_s19 = int_to_ptr.vmem [resolvable:$true] %s3073_s19 }
 0x45e   : > { %s4500_s17 = scalar_lea.vmem %s3074_s19, 64  ;;  %p4507_p1 = scmp.lt.s32.totalorder %s3074_s19, %s3074_s19 }
 0x45f   : > { %p4501_p8 = scmp.ne.s32.totalorder %s3074_s19, %s4500_s17  ;;  %p4508_p3 = scmp.lt.s32.totalorder %s4500_s17, %s4500_s17 }
 0x461   : > { %p4502_p7 = pnand %p4501_p8, %p3819_p4  ;;  %p4509_p5 = por %p4508_p3, %p4507_p1 }
 0x463   : > { %p4503_p10 = pneg %p4502_p7 }
 0x465   : > { %p4510_p13 = pnand %p4509_p5, %p4503_p10 }
 0x467   : > { %4513 = shalt.err (!%p4510_p13)
}
 0x468   : > { %s5216_s21 = sld [smem:[#allocation37_spill]] }
 0x46e   : > { %3768 = dma.vmem_to_hbm [thread:$0]  (%p3819_p4), %s3074_s19, 64, %s5216_s21, [#allocation21]  }
 0x46f   : > { %4561 = dma.done.wait (%p3819_p4), [#allocation6], 512  }
 0x470   : > { %4563 = vsyncadd (%p3819_p4), [#allocation6], 4294966784 }
 0x471   : > { %4565 = dma.done.wait (%p3819_p4), [#allocation21], 320  }
 0x472   : > { %4567 = vsyncadd (%p3819_p4), [#allocation21], 4294966976 }
 0x473 PF: > { %s5217_s24 = sld [smem:[#allocation31_spill]]  ;;  %s5220_s21 = smov %s4574_s22 }
 0x474   : > { %s5218_s5 = sld [smem:[#allocation30_spill]] }
 0x475   : > { %s5219_s23 = sld [smem:[#allocation32_spill]] }
 0x479   : > { %p29_p2 = scmp.ge.s32.totalorder %s5217_s24, 4  }
 0x47a   : > { %s5221_s22 = smov %s5218_s5 }
 0x47b   :  { %31 = sbr.rel (!%p29_p2) target bundleno = 15 (0xf), region = 174 }
 0x480   :  { %3094 = vsyncpa [#allocation5], 1 }
 0x481   :  { %3096 = vsyncpa [#allocation5 + $0x1], 1 }
 0x482   :  { %3097 = vsyncpa [#allocation8], 1 }
 0x483   :  { %3098 = vsyncpa [#allocation11], 1 }
 0x484   :  { %3099 = vsyncpa [#allocation14], 1 }
 0x485   :  { %3101 = vsyncpa [#allocation14 + $0x1], 1 }
 0x486   :  { %3102 = vsyncpa [#allocation17], 1 }
 0x487   :  { %3103 = vsyncpa [#allocation6], 1 }
 0x488   :  { %3105 = vsyncpa [#allocation6 + $0x1], 1 }
 0x489   :  { %3106 = vsyncpa [#allocation21], 1 }

</bundles_post_ra>
